<compile_context>
chip_gen: v7x
topology: tpu7x:2x2x1
jax: 0.10.0
libtpu: 0.0.40
codegen_flags: <defaults>
</compile_context>

<pallas_src>
import functools

import jax
import jax.numpy as jnp
from jax.experimental import pallas as pl
from jax.experimental.pallas import tpu as pltpu


def _effective_filter(weight, den):
    """weight: (1, 1, K, K); returns (K, K) filter scaled by kx ⊗ kx."""
    den = jnp.asarray(den, jnp.float32)
    kx = jnp.concatenate([den, jnp.array([1.0], jnp.float32), den[::-1]])
    return weight[0, 0].astype(jnp.float32) * kx[:, None] * kx[None, :]


def _fused_dmodel_kernel(w_ref, b_ref, x_ref, o_ref, pad_ref, *, H, W, K, Bb):
    """One grid step = Bb images in (H, W, Bb) layout; conv->ReLU->conv in VMEM.

    w_ref   : (K*K,) effective filter (weight * kx⊗kx), SMEM
    b_ref   : (1,)   bias, SMEM
    x_ref   : (H, W, Bb)  input block, VMEM (batch on the lane axis)
    o_ref   : (H, W, Bb)  output block, VMEM
    pad_ref : (H+K-1, W+K-1, Bb) padded f32 scratch (1-px zero halo), VMEM
    """
    P = (K - 1) // 2
    Hp, Wp = H + 2 * P, W + 2 * P
    bias = b_ref[0]

    # Zero only the halo ring; the interior is fully overwritten before each
    # conv.  Cheap (4 thin slabs) and correct under any grid-step sharding.
    if P > 0:
        pad_ref[0:P, :, :] = jnp.zeros((P, Wp, Bb), jnp.float32)
        pad_ref[P + H:Hp, :, :] = jnp.zeros((P, Wp, Bb), jnp.float32)
        pad_ref[:, 0:P, :] = jnp.zeros((Hp, P, Bb), jnp.float32)
        pad_ref[:, P + W:Wp, :] = jnp.zeros((Hp, P, Bb), jnp.float32)

    def conv_from_pad():
        acc = jnp.full((H, W, Bb), bias, jnp.float32)
        for ki in range(K):            # unrolled 3x3 shift-and-scale hot path
            for kj in range(K):        # taps slice only the two slow axes
                acc = acc + w_ref[K * ki + kj] * pad_ref[ki:ki + H, kj:kj + W, :]
        return acc

    # ---- conv1 + bias + ReLU ----
    pad_ref[P:P + H, P:P + W, :] = x_ref[...].astype(jnp.float32)
    y = jnp.maximum(conv_from_pad(), 0.0)

    # ---- conv2 from the VMEM-resident intermediate (no HBM round trip) ----
    pad_ref[P:P + H, P:P + W, :] = y
    o_ref[...] = conv_from_pad().astype(o_ref.dtype)


def _pick_batch_block(B, H, W, itemsize):
    """Images per grid step (on the lane axis).  Targets ~4 MiB of I/O per
    step; uses a multiple of 128 for large B so the lane axis stays dense, and
    otherwise takes the whole batch in one step.  Returns (Bb, padded_B)."""
    target_bytes = 4 << 20
    per_image = max(H * W * itemsize, 1)
    bb = max(1, target_bytes // per_image)
    if bb >= B:
        return B, B                              # single step, full batch
    bb = max(128, (bb // 128) * 128)             # lane-dense batch blocks
    n_steps = pl.cdiv(B, bb)
    return bb, n_steps * bb                      # pad ragged batch with zeros


def dmodel_forward(x, weight, bias, den):
    """Fused Pallas forward of dModel.  x: (B, 1, H, W) NCHW -> (B, 1, H, W)."""
    B, C, H, W = x.shape
    assert C == 1, "dModel uses a single input/output channel"
    K = weight.shape[-1]
    P = (K - 1) // 2
    Hp, Wp = H + 2 * P, W + 2 * P

    w_eff = _effective_filter(weight, den).reshape(-1)        # (K*K,) for SMEM
    itemsize = jnp.dtype(x.dtype).itemsize

    Bb, Bpad = _pick_batch_block(B, H, W, itemsize)
    grid = (Bpad // Bb,)

    # Lane-dense layout: batch on the last (lane) axis (layout plumbing only).
    xt = jnp.transpose(x[:, 0], (1, 2, 0))                    # (H, W, B)
    if Bpad != B:
        xt = jnp.pad(xt, ((0, 0), (0, 0), (0, Bpad - B)))

    # Per-step VMEM: double-buffered in + out blocks + f32 padded scratch.
    io_block = Bb * H * W * itemsize
    scratch_bytes = Bb * Hp * Wp * 4
    vmem_limit = min(max(4 * io_block + scratch_bytes + (2 << 20), 32 << 20),
                     64 << 20)

    out = pl.pallas_call(
        functools.partial(_fused_dmodel_kernel, H=H, W=W, K=K, Bb=Bb),
        out_shape=jax.ShapeDtypeStruct((H, W, Bpad), x.dtype),
        grid=grid,
        in_specs=[
            pl.BlockSpec(memory_space=pltpu.MemorySpace.SMEM),   # w_eff (K*K,)
            pl.BlockSpec(memory_space=pltpu.MemorySpace.SMEM),   # bias  (1,)
            pl.BlockSpec((H, W, Bb), lambda b: (0, 0, b)),       # input block
        ],
        out_specs=pl.BlockSpec((H, W, Bb), lambda b: (0, 0, b)),
        scratch_shapes=[pltpu.VMEM((Hp, Wp, Bb), jnp.float32)],  # padded interm
        compiler_params=pltpu.CompilerParams(
            dimension_semantics=("parallel",),
            vmem_limit_bytes=vmem_limit),
    )(w_eff, bias.astype(jnp.float32), xt)

    out = out[:, :, :B]                                          # drop batch pad
    return jnp.transpose(out, (2, 0, 1))[:, None, :, :]          # back to NCHW


# ----------------------- pure-JAX reference (for checking) ------------------
def _ref_dconv2d(x, weight, bias, den):
    B, _, H, W = x.shape
    K = weight.shape[-1]
    w_eff = _effective_filter(weight, den)
    xp = jnp.pad(x[:, 0].astype(jnp.float32), ((0, 0), (1, 1), (1, 1)))
    out = jnp.zeros((B, H, W), jnp.float32)
    for ki in range(K):
        for kj in range(K):
            out = out + w_eff[ki, kj] * xp[:, ki:ki + H, kj:kj + W]
    return (out + bias[0])[:, None, :, :]


def _ref_dmodel(x, weight, bias, den):
    y = jnp.maximum(_ref_dconv2d(x, weight, bias, den), 0.0)
    return _ref_dconv2d(y, weight, bias, den)


if __name__ == "__main__":
    key = jax.random.PRNGKey(0)
    k_x, k_w = jax.random.split(key)

    # Module config: in=1, out=1, kernel=3, stride=1, pad=1, groups=1, den=[0.75]
    den = [0.75]
    out_channels, in_channels, ksize = 1, 1, 3

    # Deterministic kaiming_normal(fan_out, relu): std = sqrt(2 / (out*K*K))
    fan_out = out_channels * ksize * ksize
    weight = jax.random.normal(k_w, (out_channels, in_channels, ksize, ksize),
                               jnp.float32) * jnp.sqrt(2.0 / fan_out)
    bias = jnp.zeros((out_channels,), jnp.float32)

    # Small NCHW input
    x = jax.random.normal(k_x, (2, 1, 16, 16), jnp.float32)

    out = dmodel_forward(x, weight, bias, den)
    out = jax.block_until_ready(out)

    ref = _ref_dmodel(x, weight, bias, den)
    assert out.shape == (2, 1, 16, 16)
    assert jnp.allclose(out, ref, atol=1e-5, rtol=1e-5), "mismatch vs reference"

    print("KERNEL_OK")
</pallas_src>

<mosaic_0001>
module attributes {stable_mosaic.version = 11 : i64} {
  func.func @_fused_dmodel_kernel(%arg0: i32, %arg1: memref<9xf32, #tpu.memory_space<smem>>, %arg2: memref<1xf32, #tpu.memory_space<smem>>, %arg3: memref<16x16x2xf32, #tpu.memory_space<vmem>>, %arg4: memref<16x16x2xf32, #tpu.memory_space<vmem>>, %arg5: memref<18x18x2xf32, #tpu.memory_space<vmem>>) attributes {dimension_semantics = [#tpu.dimension_semantics<parallel>], iteration_bounds = array<i64: 1>, scalar_prefetch = 0 : i64, scratch_operands = 1 : i64, tpu.core_type = #tpu.core_type<tc>, window_params = [{transform_indices = @transform_0, window_bounds = array<i64: 9>}, {transform_indices = @transform_1, window_bounds = array<i64: 1>}, {transform_indices = @transform_2, window_bounds = array<i64: 16, 16, 2>}, {transform_indices = @transform_3, window_bounds = array<i64: 16, 16, 2>}]} {
    %c0 = arith.constant 0 : index
    %0 = memref.load %arg2[%c0] : memref<1xf32, #tpu.memory_space<smem>>
    %cst = arith.constant 0.000000e+00 : f32
    %1 = vector.broadcast %cst : f32 to vector<1x18x2xf32>
    %c0_0 = arith.constant 0 : index
    %c0_1 = arith.constant 0 : index
    %c0_2 = arith.constant 0 : index
    %2 = vector.load %arg5[%c0_0, %c0_1, %c0_2] : memref<18x18x2xf32, #tpu.memory_space<vmem>>, vector<1x18x2xf32>
    tpu.vector_store %arg5[%c0_0, %c0_1, %c0_2], %1 {strides = array<i32>} : memref<18x18x2xf32, #tpu.memory_space<vmem>>, vector<1x18x2xf32>,
    %cst_3 = arith.constant 0.000000e+00 : f32
    %3 = vector.broadcast %cst_3 : f32 to vector<1x18x2xf32>
    %c17 = arith.constant 17 : index
    %c0_4 = arith.constant 0 : index
    %c0_5 = arith.constant 0 : index
    %4 = vector.load %arg5[%c17, %c0_4, %c0_5] : memref<18x18x2xf32, #tpu.memory_space<vmem>>, vector<1x18x2xf32>
    tpu.vector_store %arg5[%c17, %c0_4, %c0_5], %3 {strides = array<i32>} : memref<18x18x2xf32, #tpu.memory_space<vmem>>, vector<1x18x2xf32>,
    %cst_6 = arith.constant 0.000000e+00 : f32
    %5 = vector.broadcast %cst_6 : f32 to vector<18x1x2xf32>
    %c0_7 = arith.constant 0 : index
    %c0_8 = arith.constant 0 : index
    %c0_9 = arith.constant 0 : index
    %6 = vector.load %arg5[%c0_7, %c0_8, %c0_9] : memref<18x18x2xf32, #tpu.memory_space<vmem>>, vector<18x1x2xf32>
    tpu.vector_store %arg5[%c0_7, %c0_8, %c0_9], %5 {strides = array<i32>} : memref<18x18x2xf32, #tpu.memory_space<vmem>>, vector<18x1x2xf32>,
    %cst_10 = arith.constant 0.000000e+00 : f32
    %7 = vector.broadcast %cst_10 : f32 to vector<18x1x2xf32>
    %c0_11 = arith.constant 0 : index
    %c17_12 = arith.constant 17 : index
    %c0_13 = arith.constant 0 : index
    %8 = vector.load %arg5[%c0_11, %c17_12, %c0_13] : memref<18x18x2xf32, #tpu.memory_space<vmem>>, vector<18x1x2xf32>
    tpu.vector_store %arg5[%c0_11, %c17_12, %c0_13], %7 {strides = array<i32>} : memref<18x18x2xf32, #tpu.memory_space<vmem>>, vector<18x1x2xf32>,
    %c0_14 = arith.constant 0 : index
    %c0_15 = arith.constant 0 : index
    %c0_16 = arith.constant 0 : index
    %9 = vector.load %arg3[%c0_14, %c0_15, %c0_16] : memref<16x16x2xf32, #tpu.memory_space<vmem>>, vector<16x16x2xf32>
    %c1 = arith.constant 1 : index
    %c1_17 = arith.constant 1 : index
    %c0_18 = arith.constant 0 : index
    %10 = vector.load %arg5[%c1, %c1_17, %c0_18] : memref<18x18x2xf32, #tpu.memory_space<vmem>>, vector<16x16x2xf32>
    tpu.vector_store %arg5[%c1, %c1_17, %c0_18], %9 {strides = array<i32>} : memref<18x18x2xf32, #tpu.memory_space<vmem>>, vector<16x16x2xf32>,
    %11 = vector.broadcast %0 : f32 to vector<16x16x2xf32>
    %c0_19 = arith.constant 0 : index
    %12 = memref.load %arg1[%c0_19] : memref<9xf32, #tpu.memory_space<smem>>
    %c0_20 = arith.constant 0 : index
    %c0_21 = arith.constant 0 : index
    %c0_22 = arith.constant 0 : index
    %13 = vector.load %arg5[%c0_20, %c0_21, %c0_22] : memref<18x18x2xf32, #tpu.memory_space<vmem>>, vector<16x16x2xf32>
    %14 = vector.broadcast %12 : f32 to vector<16x16x2xf32>
    %15 = arith.mulf %14, %13 : vector<16x16x2xf32>
    %16 = arith.addf %11, %15 : vector<16x16x2xf32>
    %c1_23 = arith.constant 1 : index
    %17 = memref.load %arg1[%c1_23] : memref<9xf32, #tpu.memory_space<smem>>
    %c0_24 = arith.constant 0 : index
    %c1_25 = arith.constant 1 : index
    %c0_26 = arith.constant 0 : index
    %18 = vector.load %arg5[%c0_24, %c1_25, %c0_26] : memref<18x18x2xf32, #tpu.memory_space<vmem>>, vector<16x16x2xf32>
    %19 = vector.broadcast %17 : f32 to vector<16x16x2xf32>
    %20 = arith.mulf %19, %18 : vector<16x16x2xf32>
    %21 = arith.addf %16, %20 : vector<16x16x2xf32>
    %c2 = arith.constant 2 : index
    %22 = memref.load %arg1[%c2] : memref<9xf32, #tpu.memory_space<smem>>
    %c0_27 = arith.constant 0 : index
    %c2_28 = arith.constant 2 : index
    %c0_29 = arith.constant 0 : index
    %23 = vector.load %arg5[%c0_27, %c2_28, %c0_29] : memref<18x18x2xf32, #tpu.memory_space<vmem>>, vector<16x16x2xf32>
    %24 = vector.broadcast %22 : f32 to vector<16x16x2xf32>
    %25 = arith.mulf %24, %23 : vector<16x16x2xf32>
    %26 = arith.addf %21, %25 : vector<16x16x2xf32>
    %c3 = arith.constant 3 : index
    %27 = memref.load %arg1[%c3] : memref<9xf32, #tpu.memory_space<smem>>
    %c1_30 = arith.constant 1 : index
    %c0_31 = arith.constant 0 : index
    %c0_32 = arith.constant 0 : index
    %28 = vector.load %arg5[%c1_30, %c0_31, %c0_32] : memref<18x18x2xf32, #tpu.memory_space<vmem>>, vector<16x16x2xf32>
    %29 = vector.broadcast %27 : f32 to vector<16x16x2xf32>
    %30 = arith.mulf %29, %28 : vector<16x16x2xf32>
    %31 = arith.addf %26, %30 : vector<16x16x2xf32>
    %c4 = arith.constant 4 : index
    %32 = memref.load %arg1[%c4] : memref<9xf32, #tpu.memory_space<smem>>
    %c1_33 = arith.constant 1 : index
    %c1_34 = arith.constant 1 : index
    %c0_35 = arith.constant 0 : index
    %33 = vector.load %arg5[%c1_33, %c1_34, %c0_35] : memref<18x18x2xf32, #tpu.memory_space<vmem>>, vector<16x16x2xf32>
    %34 = vector.broadcast %32 : f32 to vector<16x16x2xf32>
    %35 = arith.mulf %34, %33 : vector<16x16x2xf32>
    %36 = arith.addf %31, %35 : vector<16x16x2xf32>
    %c5 = arith.constant 5 : index
    %37 = memref.load %arg1[%c5] : memref<9xf32, #tpu.memory_space<smem>>
    %c1_36 = arith.constant 1 : index
    %c2_37 = arith.constant 2 : index
    %c0_38 = arith.constant 0 : index
    %38 = vector.load %arg5[%c1_36, %c2_37, %c0_38] : memref<18x18x2xf32, #tpu.memory_space<vmem>>, vector<16x16x2xf32>
    %39 = vector.broadcast %37 : f32 to vector<16x16x2xf32>
    %40 = arith.mulf %39, %38 : vector<16x16x2xf32>
    %41 = arith.addf %36, %40 : vector<16x16x2xf32>
    %c6 = arith.constant 6 : index
    %42 = memref.load %arg1[%c6] : memref<9xf32, #tpu.memory_space<smem>>
    %c2_39 = arith.constant 2 : index
    %c0_40 = arith.constant 0 : index
    %c0_41 = arith.constant 0 : index
    %43 = vector.load %arg5[%c2_39, %c0_40, %c0_41] : memref<18x18x2xf32, #tpu.memory_space<vmem>>, vector<16x16x2xf32>
    %44 = vector.broadcast %42 : f32 to vector<16x16x2xf32>
    %45 = arith.mulf %44, %43 : vector<16x16x2xf32>
    %46 = arith.addf %41, %45 : vector<16x16x2xf32>
    %c7 = arith.constant 7 : index
    %47 = memref.load %arg1[%c7] : memref<9xf32, #tpu.memory_space<smem>>
    %c2_42 = arith.constant 2 : index
    %c1_43 = arith.constant 1 : index
    %c0_44 = arith.constant 0 : index
    %48 = vector.load %arg5[%c2_42, %c1_43, %c0_44] : memref<18x18x2xf32, #tpu.memory_space<vmem>>, vector<16x16x2xf32>
    %49 = vector.broadcast %47 : f32 to vector<16x16x2xf32>
    %50 = arith.mulf %49, %48 : vector<16x16x2xf32>
    %51 = arith.addf %46, %50 : vector<16x16x2xf32>
    %c8 = arith.constant 8 : index
    %52 = memref.load %arg1[%c8] : memref<9xf32, #tpu.memory_space<smem>>
    %c2_45 = arith.constant 2 : index
    %c2_46 = arith.constant 2 : index
    %c0_47 = arith.constant 0 : index
    %53 = vector.load %arg5[%c2_45, %c2_46, %c0_47] : memref<18x18x2xf32, #tpu.memory_space<vmem>>, vector<16x16x2xf32>
    %54 = vector.broadcast %52 : f32 to vector<16x16x2xf32>
    %55 = arith.mulf %54, %53 : vector<16x16x2xf32>
    %56 = arith.addf %51, %55 : vector<16x16x2xf32>
    %cst_48 = arith.constant 0.000000e+00 : f32
    %57 = vector.broadcast %cst_48 : f32 to vector<16x16x2xf32>
    %58 = arith.maximumf %56, %57 : vector<16x16x2xf32>
    %c1_49 = arith.constant 1 : index
    %c1_50 = arith.constant 1 : index
    %c0_51 = arith.constant 0 : index
    %59 = vector.load %arg5[%c1_49, %c1_50, %c0_51] : memref<18x18x2xf32, #tpu.memory_space<vmem>>, vector<16x16x2xf32>
    tpu.vector_store %arg5[%c1_49, %c1_50, %c0_51], %58 {strides = array<i32>} : memref<18x18x2xf32, #tpu.memory_space<vmem>>, vector<16x16x2xf32>,
    %60 = vector.broadcast %0 : f32 to vector<16x16x2xf32>
    %c0_52 = arith.constant 0 : index
    %61 = memref.load %arg1[%c0_52] : memref<9xf32, #tpu.memory_space<smem>>
    %c0_53 = arith.constant 0 : index
    %c0_54 = arith.constant 0 : index
    %c0_55 = arith.constant 0 : index
    %62 = vector.load %arg5[%c0_53, %c0_54, %c0_55] : memref<18x18x2xf32, #tpu.memory_space<vmem>>, vector<16x16x2xf32>
    %63 = vector.broadcast %61 : f32 to vector<16x16x2xf32>
    %64 = arith.mulf %63, %62 : vector<16x16x2xf32>
    %65 = arith.addf %60, %64 : vector<16x16x2xf32>
    %c1_56 = arith.constant 1 : index
    %66 = memref.load %arg1[%c1_56] : memref<9xf32, #tpu.memory_space<smem>>
    %c0_57 = arith.constant 0 : index
    %c1_58 = arith.constant 1 : index
    %c0_59 = arith.constant 0 : index
    %67 = vector.load %arg5[%c0_57, %c1_58, %c0_59] : memref<18x18x2xf32, #tpu.memory_space<vmem>>, vector<16x16x2xf32>
    %68 = vector.broadcast %66 : f32 to vector<16x16x2xf32>
    %69 = arith.mulf %68, %67 : vector<16x16x2xf32>
    %70 = arith.addf %65, %69 : vector<16x16x2xf32>
    %c2_60 = arith.constant 2 : index
    %71 = memref.load %arg1[%c2_60] : memref<9xf32, #tpu.memory_space<smem>>
    %c0_61 = arith.constant 0 : index
    %c2_62 = arith.constant 2 : index
    %c0_63 = arith.constant 0 : index
    %72 = vector.load %arg5[%c0_61, %c2_62, %c0_63] : memref<18x18x2xf32, #tpu.memory_space<vmem>>, vector<16x16x2xf32>
    %73 = vector.broadcast %71 : f32 to vector<16x16x2xf32>
    %74 = arith.mulf %73, %72 : vector<16x16x2xf32>
    %75 = arith.addf %70, %74 : vector<16x16x2xf32>
    %c3_64 = arith.constant 3 : index
    %76 = memref.load %arg1[%c3_64] : memref<9xf32, #tpu.memory_space<smem>>
    %c1_65 = arith.constant 1 : index
    %c0_66 = arith.constant 0 : index
    %c0_67 = arith.constant 0 : index
    %77 = vector.load %arg5[%c1_65, %c0_66, %c0_67] : memref<18x18x2xf32, #tpu.memory_space<vmem>>, vector<16x16x2xf32>
    %78 = vector.broadcast %76 : f32 to vector<16x16x2xf32>
    %79 = arith.mulf %78, %77 : vector<16x16x2xf32>
    %80 = arith.addf %75, %79 : vector<16x16x2xf32>
    %c4_68 = arith.constant 4 : index
    %81 = memref.load %arg1[%c4_68] : memref<9xf32, #tpu.memory_space<smem>>
    %c1_69 = arith.constant 1 : index
    %c1_70 = arith.constant 1 : index
    %c0_71 = arith.constant 0 : index
    %82 = vector.load %arg5[%c1_69, %c1_70, %c0_71] : memref<18x18x2xf32, #tpu.memory_space<vmem>>, vector<16x16x2xf32>
    %83 = vector.broadcast %81 : f32 to vector<16x16x2xf32>
    %84 = arith.mulf %83, %82 : vector<16x16x2xf32>
    %85 = arith.addf %80, %84 : vector<16x16x2xf32>
    %c5_72 = arith.constant 5 : index
    %86 = memref.load %arg1[%c5_72] : memref<9xf32, #tpu.memory_space<smem>>
    %c1_73 = arith.constant 1 : index
    %c2_74 = arith.constant 2 : index
    %c0_75 = arith.constant 0 : index
    %87 = vector.load %arg5[%c1_73, %c2_74, %c0_75] : memref<18x18x2xf32, #tpu.memory_space<vmem>>, vector<16x16x2xf32>
    %88 = vector.broadcast %86 : f32 to vector<16x16x2xf32>
    %89 = arith.mulf %88, %87 : vector<16x16x2xf32>
    %90 = arith.addf %85, %89 : vector<16x16x2xf32>
    %c6_76 = arith.constant 6 : index
    %91 = memref.load %arg1[%c6_76] : memref<9xf32, #tpu.memory_space<smem>>
    %c2_77 = arith.constant 2 : index
    %c0_78 = arith.constant 0 : index
    %c0_79 = arith.constant 0 : index
    %92 = vector.load %arg5[%c2_77, %c0_78, %c0_79] : memref<18x18x2xf32, #tpu.memory_space<vmem>>, vector<16x16x2xf32>
    %93 = vector.broadcast %91 : f32 to vector<16x16x2xf32>
    %94 = arith.mulf %93, %92 : vector<16x16x2xf32>
    %95 = arith.addf %90, %94 : vector<16x16x2xf32>
    %c7_80 = arith.constant 7 : index
    %96 = memref.load %arg1[%c7_80] : memref<9xf32, #tpu.memory_space<smem>>
    %c2_81 = arith.constant 2 : index
    %c1_82 = arith.constant 1 : index
    %c0_83 = arith.constant 0 : index
    %97 = vector.load %arg5[%c2_81, %c1_82, %c0_83] : memref<18x18x2xf32, #tpu.memory_space<vmem>>, vector<16x16x2xf32>
    %98 = vector.broadcast %96 : f32 to vector<16x16x2xf32>
    %99 = arith.mulf %98, %97 : vector<16x16x2xf32>
    %100 = arith.addf %95, %99 : vector<16x16x2xf32>
    %c8_84 = arith.constant 8 : index
    %101 = memref.load %arg1[%c8_84] : memref<9xf32, #tpu.memory_space<smem>>
    %c2_85 = arith.constant 2 : index
    %c2_86 = arith.constant 2 : index
    %c0_87 = arith.constant 0 : index
    %102 = vector.load %arg5[%c2_85, %c2_86, %c0_87] : memref<18x18x2xf32, #tpu.memory_space<vmem>>, vector<16x16x2xf32>
    %103 = vector.broadcast %101 : f32 to vector<16x16x2xf32>
    %104 = arith.mulf %103, %102 : vector<16x16x2xf32>
    %105 = arith.addf %100, %104 : vector<16x16x2xf32>
    %c0_88 = arith.constant 0 : index
    %c0_89 = arith.constant 0 : index
    %c0_90 = arith.constant 0 : index
    %106 = vector.load %arg4[%c0_88, %c0_89, %c0_90] : memref<16x16x2xf32, #tpu.memory_space<vmem>>, vector<16x16x2xf32>
    tpu.vector_store %arg4[%c0_88, %c0_89, %c0_90], %105 {strides = array<i32>} : memref<16x16x2xf32, #tpu.memory_space<vmem>>, vector<16x16x2xf32>,
    return
  }
  func.func @transform_0(%arg0: i32) -> i32 {
    %c0_i32 = arith.constant 0 : i32
    %c0_i32_0 = arith.constant 0 : i32
    return %c0_i32 : i32
  }
  func.func @transform_1(%arg0: i32) -> i32 {
    %c0_i32 = arith.constant 0 : i32
    %c0_i32_0 = arith.constant 0 : i32
    return %c0_i32 : i32
  }
  func.func @transform_2(%arg0: i32) -> (i32, i32, i32) {
    %c0_i32 = arith.constant 0 : i32
    %c0_i32_0 = arith.constant 0 : i32
    %c0_i32_1 = arith.constant 0 : i32
    return %c0_i32, %c0_i32_0, %arg0 : i32, i32, i32
  }
  func.func @transform_3(%arg0: i32) -> (i32, i32, i32) {
    %c0_i32 = arith.constant 0 : i32
    %c0_i32_0 = arith.constant 0 : i32
    %c0_i32_1 = arith.constant 0 : i32
    return %c0_i32, %c0_i32_0, %arg0 : i32, i32, i32
  }
}

</mosaic_0001>

<bundles_post_ra>
// kernel: tpu_custom_call.1
= control target key start
LH: loop header
LB: loop body
LE: loop exit
PB: predicated region body
PF: predicated region fallthrough
CT: control target
= control target key end

     0   :  { %9 = vsyncpa [#allocation5], 0  ;;  %s3420_s0 = inlined_call_operand.vmem [shape: f32[9], index: 0, kind: input, shape index: {}]   ;;  %s3421_s1 = inlined_call_operand.<no memory space> [shape: f32[1], index: 1, kind: input, shape index: {}]   ;;  %s3422_s2 = inlined_call_operand.vmem [shape: f32[16,16,2], index: 2, kind: input, shape index: {}]   ;;  %s3423_s3 = inlined_call_operand.vmem [shape: f32[16,16,2], index: 3, kind: output, shape index: {}]  }
   0x1   :  { %s16_s14 = sshll.u32 %s3420_s0, 4  ;;  %s17_s14 = int_to_ptr.vmem [resolvable:$true] %s16_s14 }
   0x2   :  { %s2027_s15 = scalar_lea.vmem %s17_s14, 16  ;;  %p2032_p1 = scmp.lt.s32.totalorder %s17_s14, %s17_s14 }
   0x3   :  { %p2028_p0 = scmp.ne.s32.totalorder %s17_s14, %s2027_s15  ;;  %p2033_p2 = scmp.lt.s32.totalorder %s2027_s15, %s2027_s15 }
   0x5   :  { %p2034_p3 = por %p2033_p2, %p2032_p1 }
   0x7   :  { %p2035_p4 = pnand %p2034_p3, %p2028_p0 }
   0x9   :  { %2038 = shalt.err (!%p2035_p4)
}
   0xa   :  { %s2041_s16 = smov [#allocation4]  }
   0xb   :  { %19 = dma.vmem_to_smem %s17_s14, 16, %s2041_s16, [#allocation5]  }
   0xc   :  { %2039 = dma.done.wait [#allocation5], 16  }
   0xd   :  { %2040 = vsyncadd [#allocation5], 4294967280 }
   0xe   :  { %27 = sfence }
   0xf   :  { %vm29_vm0 = vcmask 15360   ;;  %s2066_s17 = sld [smem:[#allocation4]]  ;;  %s2068_s18 = sld [smem:[#allocation4 + $0x1]]  ;;  %v2042_v0 = vmov 0.0   ;;  %vm32_vm1 = vcmask 9216   ;;  %vm38_vm2 = vcmask 8192  }
  0x10   :  { %30 = vst.msk [vmem:[#allocation2] sm:$0xff] %vm29_vm0, %v2042_v0  ;;  %31 = vst.msk [vmem:[#allocation2 + $0x8] sm:$0xff] %vm29_vm0, %v2042_v0  ;;  %s2074_s0 = sld [smem:[#allocation4 + $0x2]]  ;;  %v75_v1 = vld [vmem:[%s3422_s2] sm:$0xff]  ;;  %v76_v2 = vld [vmem:[%s3422_s2 + $0x8] sm:$0xff]  ;;  %s2121_s25 = sld [smem:[#allocation4 + $0x3]]  ;;  %v2197_v20 = vstv %s3421_s1 }
  0x11   :  { %35 = vst.msk [vmem:[#allocation2 + $0x198] sm:$0xff] %vm29_vm0, %v2042_v0  ;;  %36 = vst.msk [vmem:[#allocation2 + $0x1a0] sm:$0xff] %vm29_vm0, %v2042_v0  ;;  %v77_v3 = vld [vmem:[%s3422_s2 + $0x10] sm:$0xff]  ;;  %s2123_s26 = sld [smem:[#allocation4 + $0x4]]  ;;  %v78_v4 = vld [vmem:[%s3422_s2 + $0x18] sm:$0xff]  ;;  %s2131_s29 = sld [smem:[#allocation4 + $0x6]] }
  0x12   :  { %33 = vst.msk [vmem:[#allocation2 + $0x10] sm:$0x3] %vm32_vm1, %v2042_v0  ;;  %37 = vst.msk [vmem:[#allocation2 + $0x1a8] sm:$0x3] %vm32_vm1, %v2042_v0  ;;  %s2133_s30 = sld [smem:[#allocation4 + $0x7]]  ;;  %v79_v5 = vld [vmem:[%s3422_s2 + $0x20] sm:$0xff] }
  0x13   :  { %40 = vst.msk [vmem:[#allocation2 + $0x18] sm:$0x1] %vm38_vm2, %v2042_v0  ;;  %39 = vst.msk [vmem:[#allocation2] sm:$0x1] %vm38_vm2, %v2042_v0  ;;  %v80_v6 = vld [vmem:[%s3422_s2 + $0x28] sm:$0xff]  ;;  %s2142_s8 = sld [smem:[#allocation4 + $0x5]] }
  0x14   :  { %41 = vst.msk [vmem:[#allocation2 + $0x30] sm:$0x1] %vm38_vm2, %v2042_v0  ;;  %42 = vst.msk [vmem:[#allocation2 + $0x48] sm:$0x1] %vm38_vm2, %v2042_v0  ;;  %s2144_s9 = sld [smem:[#allocation4 + $0x8]]  ;;  %v81_v7 = vld [vmem:[%s3422_s2 + $0x30] sm:$0xff] }
  0x15   :  { %43 = vst.msk [vmem:[#allocation2 + $0x60] sm:$0x1] %vm38_vm2, %v2042_v0  ;;  %44 = vst.msk [vmem:[#allocation2 + $0x78] sm:$0x1] %vm38_vm2, %v2042_v0  ;;  %v82_v8 = vld [vmem:[%s3422_s2 + $0x38] sm:$0xff]  ;;  %v83_v9 = vld [vmem:[%s3422_s2 + $0x40] sm:$0xff]  ;;  %v2166_v12 = vstv %s2066_s17  ;;  %v2169_v13 = vstv %s2068_s18 }
  0x16   :  { %45 = vst.msk [vmem:[#allocation2 + $0x90] sm:$0x1] %vm38_vm2, %v2042_v0  ;;  %46 = vst.msk [vmem:[#allocation2 + $0xa8] sm:$0x1] %vm38_vm2, %v2042_v0  ;;  %v84_v10 = vld [vmem:[%s3422_s2 + $0x48] sm:$0xff]  ;;  %v85_v11 = vld [vmem:[%s3422_s2 + $0x50] sm:$0xff]  ;;  %v2181_v16 = vstv %s2074_s0  ;;  %v2204_v27 = vstv %s2121_s25 }
  0x17   :  { %47 = vst.msk [vmem:[#allocation2 + $0xc0] sm:$0x1] %vm38_vm2, %v2042_v0  ;;  %48 = vst.msk [vmem:[#allocation2 + $0xd8] sm:$0x1] %vm38_vm2, %v2042_v0  ;;  %v86_v14 = vld [vmem:[%s3422_s2 + $0x58] sm:$0xff]  ;;  %v87_v15 = vld [vmem:[%s3422_s2 + $0x60] sm:$0xff]  ;;  %v2207_v28 = vstv %s2123_s26  ;;  %v2210_v29 = vstv %s2131_s29 }
  0x18   :  { %49 = vst.msk [vmem:[#allocation2 + $0xf0] sm:$0x1] %vm38_vm2, %v2042_v0  ;;  %50 = vst.msk [vmem:[#allocation2 + $0x108] sm:$0x1] %vm38_vm2, %v2042_v0  ;;  %v88_v17 = vld [vmem:[%s3422_s2 + $0x68] sm:$0xff]  ;;  %v89_v18 = vld [vmem:[%s3422_s2 + $0x70] sm:$0xff]  ;;  %v2217_v35 = vstv %s2133_s30 }
  0x19   :  { %51 = vst.msk [vmem:[#allocation2 + $0x120] sm:$0x1] %vm38_vm2, %v2042_v0  ;;  %52 = vst.msk [vmem:[#allocation2 + $0x138] sm:$0x1] %vm38_vm2, %v2042_v0  ;;  %v90_v19 = vld [vmem:[%s3422_s2 + $0x78] sm:$0xff]  ;;  %v143_v21 = vld [vmem:[#allocation2 + $0x8] sm:$0xff]  ;;  %v2226_v43 = vstv %s2142_s8 }
  0x1a   :  { %53 = vst.msk [vmem:[#allocation2 + $0x150] sm:$0x1] %vm38_vm2, %v2042_v0  ;;  %54 = vst.msk [vmem:[#allocation2 + $0x168] sm:$0x1] %vm38_vm2, %v2042_v0  ;;  %v240_v22 = vld [vmem:[#allocation2 + $0x1] sm:$0xff]  ;;  %v176_v24 = vmul.f32 %v2166_v12, %v143_v21  ;;  %v859_v26 = vld [vmem:[#allocation2 + $0x199] sm:$0xff]  ;;  %v2236_v50 = vstv %s2144_s9 }
  0x1b   :  { %55 = vst.msk [vmem:[#allocation2 + $0x180] sm:$0x1] %vm38_vm2, %v2042_v0  ;;  %56 = vst.msk [vmem:[#allocation2 + $0x198] sm:$0x1] %vm38_vm2, %v2042_v0  ;;  %v338_v23 = vld [vmem:[#allocation2 + $0x2] sm:$0xff]  ;;  %v273_v30 = vmul.f32 %v2169_v13, %v240_v22  ;;  %v957_v38 = vld [vmem:[#allocation2 + $0x19a] sm:$0xff]  ;;  %v2233_v49 = vmul.f32 %v2217_v35, %v859_v26 }
  0x1c   :  { %58 = vst.msk [vmem:[#allocation2 + $0x29] sm:$0x1] %vm38_vm2, %v2042_v0  ;;  %59 = vst.msk [vmem:[#allocation2 + $0x41] sm:$0x1] %vm38_vm2, %v2042_v0  ;;  %v762_v25 = vld [vmem:[#allocation2 + $0x1a0] sm:$0xff]  ;;  %v2214_v31 = vmul.f32 %v2181_v16, %v338_v23  ;;  %v241_v32 = vld [vmem:[#allocation2 + $0x9] sm:$0xff]  ;;  %v208_v37 = vadd.f32 %v176_v24, %v2197_v20  ;;  %v2247_v62 = vmul.f32 %v2236_v50, %v957_v38 }
  0x1d   :  { %60 = vst.msk [vmem:[#allocation2 + $0x59] sm:$0x1] %vm38_vm2, %v2042_v0  ;;  %61 = vst.msk [vmem:[#allocation2 + $0x71] sm:$0x1] %vm38_vm2, %v2042_v0  ;;  %v142_v33 = vld [vmem:[#allocation2] sm:$0xff]  ;;  %v2220_v36 = vmul.f32 %v2210_v29, %v762_v25  ;;  %v274_v39 = vmul.f32 %v2169_v13, %v241_v32  ;;  %s2752_s29 = sld [smem:[#allocation4 + $0x1]] }
  0x1e   :  { %62 = vst.msk [vmem:[#allocation2 + $0x89] sm:$0x1] %vm38_vm2, %v2042_v0  ;;  %63 = vst.msk [vmem:[#allocation2 + $0xa1] sm:$0x1] %vm38_vm2, %v2042_v0  ;;  %v175_v40 = vmul.f32 %v2166_v12, %v142_v33  ;;  %v860_v42 = vld [vmem:[#allocation2 + $0x1a1] sm:$0xff]  ;;  %s2765_s30 = sld [smem:[#allocation4 + $0x2]] }
  0x1f   :  { %64 = vst.msk [vmem:[#allocation2 + $0xb9] sm:$0x1] %vm38_vm2, %v2042_v0  ;;  %65 = vst.msk [vmem:[#allocation2 + $0xd1] sm:$0x1] %vm38_vm2, %v2042_v0  ;;  %v306_v51 = vadd.f32 %v274_v39, %v208_v37  ;;  %v2244_v60 = vmul.f32 %v2217_v35, %v860_v42  ;;  %s2779_s8 = sld [smem:[#allocation4 + $0x3]]  ;;  %s2781_s9 = sld [smem:[#allocation4 + $0x4]] }
  0x20   :  { %66 = vst.msk [vmem:[#allocation2 + $0xe9] sm:$0x1] %vm38_vm2, %v2042_v0  ;;  %67 = vst.msk [vmem:[#allocation2 + $0x101] sm:$0x1] %vm38_vm2, %v2042_v0  ;;  %v207_v52 = vadd.f32 %v175_v40, %v2197_v20  ;;  %s2785_s10 = sld [smem:[#allocation4 + $0x5]]  ;;  %s2793_s11 = sld [smem:[#allocation4 + $0x6]] }
  0x21   :  { %68 = vst.msk [vmem:[#allocation2 + $0x119] sm:$0x1] %vm38_vm2, %v2042_v0  ;;  %69 = vst.msk [vmem:[#allocation2 + $0x131] sm:$0x1] %vm38_vm2, %v2042_v0  ;;  %s2795_s12 = sld [smem:[#allocation4 + $0x7]]  ;;  %s2800_s13 = sld [smem:[#allocation4 + $0x8]] }
  0x22   :  { %70 = vst.msk [vmem:[#allocation2 + $0x149] sm:$0x1] %vm38_vm2, %v2042_v0  ;;  %71 = vst.msk [vmem:[#allocation2 + $0x161] sm:$0x1] %vm38_vm2, %v2042_v0  ;;  %v761_v41 = vld [vmem:[#allocation2 + $0x198] sm:$0xff]  ;;  %v2249_v63 = vadd.f32 %v273_v30, %v207_v52 }
  0x23   :  { %72 = vst.msk [vmem:[#allocation2 + $0x179] sm:$0x1] %vm38_vm2, %v2042_v0  ;;  %73 = vst.msk [vmem:[#allocation2 + $0x191] sm:$0x1] %vm38_vm2, %v2042_v0  ;;  %v2230_v48 = vmul.f32 %v2210_v29, %v761_v41 }
  0x24   :  { %108 = vst.msk [vmem:[#allocation2 + $0x19] sm:$0xff] %vm29_vm0, %v75_v1  ;;  %109 = vst.msk [vmem:[#allocation2 + $0x21] sm:$0xff] %vm29_vm0, %v76_v2 }
  0x25   :  { %57 = vst.msk [vmem:[#allocation2 + $0x11] sm:$0x1] %vm38_vm2, %v2042_v0  ;;  %74 = vst.msk [vmem:[#allocation2 + $0x1a9] sm:$0x1] %vm38_vm2, %v2042_v0 }
  0x26   :  { %110 = vst.msk [vmem:[#allocation2 + $0x31] sm:$0xff] %vm29_vm0, %v77_v3  ;;  %111 = vst.msk [vmem:[#allocation2 + $0x39] sm:$0xff] %vm29_vm0, %v78_v4 }
  0x27   :  { %112 = vst.msk [vmem:[#allocation2 + $0x49] sm:$0xff] %vm29_vm0, %v79_v5  ;;  %113 = vst.msk [vmem:[#allocation2 + $0x51] sm:$0xff] %vm29_vm0, %v80_v6 }
  0x28   :  { %114 = vst.msk [vmem:[#allocation2 + $0x61] sm:$0xff] %vm29_vm0, %v81_v7  ;;  %115 = vst.msk [vmem:[#allocation2 + $0x69] sm:$0xff] %vm29_vm0, %v82_v8 }
  0x29   :  { %116 = vst.msk [vmem:[#allocation2 + $0x79] sm:$0xff] %vm29_vm0, %v83_v9  ;;  %117 = vst.msk [vmem:[#allocation2 + $0x81] sm:$0xff] %vm29_vm0, %v84_v10 }
  0x2a   :  { %118 = vst.msk [vmem:[#allocation2 + $0x91] sm:$0xff] %vm29_vm0, %v85_v11  ;;  %119 = vst.msk [vmem:[#allocation2 + $0x99] sm:$0xff] %vm29_vm0, %v86_v14 }
  0x2b   :  { %120 = vst.msk [vmem:[#allocation2 + $0xa9] sm:$0xff] %vm29_vm0, %v87_v15  ;;  %121 = vst.msk [vmem:[#allocation2 + $0xb1] sm:$0xff] %vm29_vm0, %v88_v17  ;;  %v144_v45 = vld [vmem:[#allocation2 + $0x18] sm:$0xff] }
  0x2c   :  { %122 = vst.msk [vmem:[#allocation2 + $0xc1] sm:$0xff] %vm29_vm0, %v89_v18  ;;  %123 = vst.msk [vmem:[#allocation2 + $0xc9] sm:$0xff] %vm29_vm0, %v90_v19  ;;  %v339_v34 = vld [vmem:[#allocation2 + $0xa] sm:$0xff]  ;;  %v242_v46 = vld [vmem:[#allocation2 + $0x19] sm:$0xff]  ;;  %v177_v53 = vmul.f32 %v2166_v12, %v144_v45 }
  0x2d   :  { %3433 = vst [vmem:[#allocation7_spill] sm:$0xff] %v2220_v36  ;;  %v372_v44 = vmul.f32 %v2181_v16, %v339_v34  ;;  %v146_v47 = vld [vmem:[#allocation2 + $0x30] sm:$0xff]  ;;  %3434 = vst [vmem:[#allocation8_spill] sm:$0xff] %v2230_v48  ;;  %v275_v54 = vmul.f32 %v2169_v13, %v242_v46  ;;  %v147_v56 = vld [vmem:[#allocation2 + $0x38] sm:$0xff] }
  0x2e   :  { %3435 = vst [vmem:[#allocation9_spill] sm:$0xff] %v2233_v49  ;;  %v244_v55 = vld [vmem:[#allocation2 + $0x31] sm:$0xff]  ;;  %v245_v57 = vld [vmem:[#allocation2 + $0x39] sm:$0xff]  ;;  %v179_v58 = vmul.f32 %v2166_v12, %v146_v47  ;;  %3436 = vst [vmem:[#allocation10_spill] sm:$0xff] %v2244_v60  ;;  %v209_v0 = vadd.f32 %v177_v53, %v2197_v20  ;;  %v2253_v1 = vmul.f32 %v2204_v27, %v146_v47 }
  0x2f   :  { %v277_v59 = vmul.f32 %v2169_v13, %v244_v55  ;;  %v342_v61 = vld [vmem:[#allocation2 + $0x32] sm:$0xff]  ;;  %3437 = vst [vmem:[#allocation11_spill] sm:$0xff] %v2247_v62  ;;  %v2256_v2 = vmul.f32 %v2207_v28, %v244_v55  ;;  %v2258_v3 = vadd.f32 %v372_v44, %v306_v51  ;;  %v958_v4 = vld [vmem:[#allocation2 + $0x1a2] sm:$0xff]  ;;  %v180_v6 = vmul.f32 %v2166_v12, %v147_v56  ;;  %v343_v24 = vld [vmem:[#allocation2 + $0x3a] sm:$0xff] }
  0x30   :  { %v211_v5 = vadd.f32 %v179_v58, %v2197_v20  ;;  %v278_v7 = vmul.f32 %v2169_v13, %v245_v57  ;;  %v148_v8 = vld [vmem:[#allocation2 + $0x48] sm:$0xff]  ;;  %v2263_v9 = vadd.f32 %v275_v54, %v209_v0  ;;  %v2266_v10 = vmul.f32 %v2210_v29, %v146_v47  ;;  %v149_v37 = vld [vmem:[#allocation2 + $0x50] sm:$0xff] }
  0x31   :  { %v375_v11 = vmul.f32 %v2181_v16, %v342_v61  ;;  %v2270_v14 = vmul.f32 %v2204_v27, %v147_v56  ;;  %v246_v15 = vld [vmem:[#allocation2 + $0x49] sm:$0xff]  ;;  %v212_v18 = vadd.f32 %v180_v6, %v2197_v20  ;;  %v2274_v19 = vmul.f32 %v2207_v28, %v245_v57  ;;  %v247_v38 = vld [vmem:[#allocation2 + $0x51] sm:$0xff]  ;;  %v248_v0 = vld [vmem:[#allocation2 + $0x61] sm:$0xff] }
  0x32   :  { %3438 = vst [vmem:[#allocation12_spill] sm:$0xff] %v2266_v10  ;;  %v309_v17 = vadd.f32 %v277_v59, %v211_v5  ;;  %v2277_v21 = vmul.f32 %v2226_v43, %v342_v61  ;;  %v2280_v22 = vmul.f32 %v2210_v29, %v147_v56  ;;  %v2283_v23 = vmul.f32 %v2217_v35, %v245_v57  ;;  %v344_v39 = vld [vmem:[#allocation2 + $0x4a] sm:$0xff]  ;;  %v150_v56 = vld [vmem:[#allocation2 + $0x60] sm:$0xff] }
  0x33   :  { %v2286_v25 = vmul.f32 %v2236_v50, %v958_v4  ;;  %v181_v26 = vmul.f32 %v2166_v12, %v148_v8  ;;  %v310_v30 = vadd.f32 %v278_v7, %v212_v18  ;;  %v279_v33 = vmul.f32 %v2169_v13, %v246_v15 }
  0x34   :  { %v407_v32 = vadd.f32 %v375_v11, %v309_v17  ;;  %v473_v34 = vmul.f32 %v2204_v27, %v148_v8  ;;  %v571_v41 = vmul.f32 %v2207_v28, %v246_v15  ;;  %v2294_v42 = vmul.f32 %v2210_v29, %v148_v8  ;;  %v345_v8 = vld [vmem:[#allocation2 + $0x52] sm:$0xff]  ;;  %v151_v11 = vld [vmem:[#allocation2 + $0x68] sm:$0xff] }
  0x35   :  { %3439 = vst [vmem:[#allocation13_spill] sm:$0xff] %v2286_v25  ;;  %v213_v40 = vadd.f32 %v181_v26, %v2197_v20  ;;  %v2297_v44 = vmul.f32 %v2217_v35, %v246_v15  ;;  %v376_v46 = vmul.f32 %v2181_v16, %v343_v24  ;;  %v2301_v47 = vmul.f32 %v2226_v43, %v343_v24  ;;  %v249_v26 = vld [vmem:[#allocation2 + $0x69] sm:$0xff] }
  0x36   :  { %v505_v45 = vadd.f32 %v473_v34, %v407_v32  ;;  %v2304_v51 = vmul.f32 %v2236_v50, %v343_v24  ;;  %v182_v53 = vmul.f32 %v2166_v12, %v149_v37  ;;  %v280_v54 = vmul.f32 %v2169_v13, %v247_v38  ;;  %v346_v32 = vld [vmem:[#allocation2 + $0x62] sm:$0xff] }
  0x37   :  { %v311_v52 = vadd.f32 %v279_v33, %v213_v40  ;;  %v377_v55 = vmul.f32 %v2181_v16, %v344_v39  ;;  %v474_v58 = vmul.f32 %v2204_v27, %v149_v37  ;;  %v2311_v59 = vmul.f32 %v2207_v28, %v247_v38  ;;  %v91_v33 = vld [vmem:[%s3422_s2 + $0x80] sm:$0xff] }
  0x38   :  { %3440 = vst [vmem:[#allocation14_spill] sm:$0xff] %v2304_v51  ;;  %v603_v57 = vadd.f32 %v571_v41, %v505_v45  ;;  %v669_v61 = vmul.f32 %v2226_v43, %v344_v39  ;;  %v214_v4 = vadd.f32 %v182_v53, %v2197_v20  ;;  %v2316_v6 = vmul.f32 %v2210_v29, %v149_v37  ;;  %v94_v41 = vld [vmem:[%s3422_s2 + $0x98] sm:$0xff] }
  0x39   :  { %v409_v5 = vadd.f32 %v377_v55, %v311_v52  ;;  %v2319_v7 = vmul.f32 %v2217_v35, %v247_v38  ;;  %v2322_v17 = vmul.f32 %v2236_v50, %v344_v39  ;;  %v408_v18 = vadd.f32 %v376_v46, %v310_v30  ;;  %124 = vst.msk [vmem:[#allocation2 + $0xd9] sm:$0xff] %vm29_vm0, %v91_v33  ;;  %v92_v30 = vld [vmem:[%s3422_s2 + $0x88] sm:$0xff]  ;;  %v93_v39 = vld [vmem:[%s3422_s2 + $0x90] sm:$0xff]  ;;  %v98_v33 = vld [vmem:[%s3422_s2 + $0xb8] sm:$0xff] }
  0x3a   :  { %3441 = vst [vmem:[#allocation15_spill] sm:$0xff] %v2316_v6  ;;  %v701_v15 = vadd.f32 %v669_v61, %v603_v57  ;;  %v183_v24 = vmul.f32 %v2166_v12, %v150_v56  ;;  %v312_v34 = vadd.f32 %v280_v54, %v214_v4  ;;  %v281_v37 = vmul.f32 %v2169_v13, %v248_v0  ;;  %v95_v54 = vld [vmem:[%s3422_s2 + $0xa0] sm:$0xff]  ;;  %v96_v55 = vld [vmem:[%s3422_s2 + $0xa8] sm:$0xff] }
  0x3b   :  { %3442 = vst [vmem:[#allocation16_spill] sm:$0xff] %v2319_v7  ;;  %3443 = vst [vmem:[#allocation17_spill] sm:$0xff] %v2322_v17  ;;  %v475_v38 = vmul.f32 %v2204_v27, %v150_v56  ;;  %v573_v40 = vmul.f32 %v2207_v28, %v248_v0  ;;  %v768_v46 = vmul.f32 %v2210_v29, %v150_v56  ;;  %v97_v56 = vld [vmem:[%s3422_s2 + $0xb0] sm:$0xff] }
  0x3c   :  { %v215_v45 = vadd.f32 %v183_v24, %v2197_v20  ;;  %v866_v52 = vmul.f32 %v2217_v35, %v248_v0  ;;  %v378_v53 = vmul.f32 %v2181_v16, %v345_v8  ;;  %125 = vst.msk [vmem:[#allocation2 + $0xe1] sm:$0xff] %vm29_vm0, %v92_v30  ;;  %126 = vst.msk [vmem:[#allocation2 + $0xf1] sm:$0xff] %vm29_vm0, %v93_v39  ;;  %v152_v24 = vld [vmem:[#allocation2 + $0x78] sm:$0xff]  ;;  %v101_v39 = vld [vmem:[%s3422_s2 + $0xd0] sm:$0xff] }
  0x3d   :  { %127 = vst.msk [vmem:[#allocation2 + $0xf9] sm:$0xff] %vm29_vm0, %v94_v41  ;;  %v507_v57 = vadd.f32 %v475_v38, %v409_v5  ;;  %v506_v61 = vadd.f32 %v474_v58, %v408_v18  ;;  %v2358_v0 = vmul.f32 %v2226_v43, %v345_v8  ;;  %v2361_v4 = vmul.f32 %v2236_v50, %v345_v8  ;;  %v99_v58 = vld [vmem:[%s3422_s2 + $0xc0] sm:$0xff]  ;;  %v100_v5 = vld [vmem:[%s3422_s2 + $0xc8] sm:$0xff]  ;;  %v102_v41 = vld [vmem:[%s3422_s2 + $0xd8] sm:$0xff] }
  0x3e   :  { %128 = vst.msk [vmem:[#allocation2 + $0x109] sm:$0xff] %vm29_vm0, %v95_v54  ;;  %129 = vst.msk [vmem:[#allocation2 + $0x111] sm:$0xff] %vm29_vm0, %v96_v55  ;;  %v313_v8 = vadd.f32 %v281_v37, %v215_v45  ;;  %v800_v18 = vadd.f32 %v768_v46, %v701_v15  ;;  %v184_v38 = vmul.f32 %v2166_v12, %v151_v11  ;;  %v103_v15 = vld [vmem:[%s3422_s2 + $0xe0] sm:$0xff]  ;;  %v104_v55 = vld [vmem:[%s3422_s2 + $0xe8] sm:$0xff] }
  0x3f   :  { %3444 = vst [vmem:[#allocation18_spill] sm:$0xff] %v2361_v4  ;;  %130 = vst.msk [vmem:[#allocation2 + $0x121] sm:$0xff] %vm29_vm0, %v97_v56  ;;  %v282_v30 = vmul.f32 %v2169_v13, %v249_v26  ;;  %v605_v37 = vadd.f32 %v573_v40, %v507_v57  ;;  %v379_v45 = vmul.f32 %v2181_v16, %v346_v32  ;;  %v105_v40 = vld [vmem:[%s3422_s2 + $0xf0] sm:$0xff]  ;;  %v106_v56 = vld [vmem:[%s3422_s2 + $0xf8] sm:$0xff]  ;;  %s2744_s2 = sld [smem:[#allocation4]] }
  0x40   :  { %131 = vst.msk [vmem:[#allocation2 + $0x129] sm:$0xff] %vm29_vm0, %v98_v33  ;;  %132 = vst.msk [vmem:[#allocation2 + $0x139] sm:$0xff] %vm29_vm0, %v99_v58  ;;  %v476_v46 = vmul.f32 %v2204_v27, %v151_v11  ;;  %v574_v54 = vmul.f32 %v2207_v28, %v249_v26  ;;  %v898_v57 = vadd.f32 %v866_v52, %v800_v18  ;;  %v347_v52 = vld [vmem:[#allocation2 + $0x6a] sm:$0xff] }
  0x41   :  { %133 = vst.msk [vmem:[#allocation2 + $0x141] sm:$0xff] %vm29_vm0, %v100_v5  ;;  %134 = vst.msk [vmem:[#allocation2 + $0x151] sm:$0xff] %vm29_vm0, %v101_v39  ;;  %v216_v33 = vadd.f32 %v184_v38, %v2197_v20  ;;  %v671_v58 = vmul.f32 %v2226_v43, %v346_v32  ;;  %v769_v5 = vmul.f32 %v2210_v29, %v151_v11  ;;  %v250_v39 = vld [vmem:[#allocation2 + $0x79] sm:$0xff] }
  0x42   :  { %135 = vst.msk [vmem:[#allocation2 + $0x159] sm:$0xff] %vm29_vm0, %v102_v41  ;;  %136 = vst.msk [vmem:[#allocation2 + $0x169] sm:$0xff] %vm29_vm0, %v103_v15  ;;  %v411_v41 = vadd.f32 %v379_v45, %v313_v8  ;;  %v2411_v15 = vmul.f32 %v2217_v35, %v249_v26  ;;  %v964_v10 = vmul.f32 %v2236_v50, %v346_v32 }
  0x43   :  { %137 = vst.msk [vmem:[#allocation2 + $0x171] sm:$0xff] %vm29_vm0, %v104_v55  ;;  %138 = vst.msk [vmem:[#allocation2 + $0x181] sm:$0xff] %vm29_vm0, %v105_v40  ;;  %v410_v18 = vadd.f32 %v378_v53, %v312_v34  ;;  %v314_v38 = vadd.f32 %v282_v30, %v216_v33  ;;  %v703_v25 = vadd.f32 %v671_v58, %v605_v37  ;;  %v153_v53 = vld [vmem:[#allocation2 + $0x80] sm:$0xff] }
  0x44   :  { %139 = vst.msk [vmem:[#allocation2 + $0x189] sm:$0xff] %vm29_vm0, %v106_v56  ;;  %v604_v62 = vadd.f32 %v2311_v59, %v506_v61  ;;  %v185_v11 = vmul.f32 %v2166_v12, %v152_v24  ;;  %v996_v4 = vadd.f32 %v964_v10, %v898_v57  ;;  %v283_v55 = vmul.f32 %v2169_v13, %v250_v39  ;;  %v251_v30 = vld [vmem:[#allocation2 + $0x81] sm:$0xff] }
  0x45   :  { %v477_v40 = vmul.f32 %v2204_v27, %v152_v24  ;;  %v575_v8 = vmul.f32 %v2207_v28, %v250_v39  ;;  %v770_v45 = vmul.f32 %v2210_v29, %v152_v24  ;;  %v868_v32 = vmul.f32 %v2217_v35, %v250_v39  ;;  %v348_v59 = vld [vmem:[#allocation2 + $0x7a] sm:$0xff] }
  0x46   :  { %v217_v26 = vadd.f32 %v185_v11, %v2197_v20  ;;  %v380_v34 = vmul.f32 %v2181_v16, %v347_v52  ;;  %v1028_v61 = vmax.f32 %v996_v4, 0.0  ;;  %v508_v10 = vadd.f32 %v476_v46, %v410_v18 }
  0x47   :  { %v509_v37 = vadd.f32 %v477_v40, %v411_v41  ;;  %v672_v56 = vmul.f32 %v2226_v43, %v347_v52  ;;  %v802_v33 = vadd.f32 %v770_v45, %v703_v25  ;;  %v702_v58 = vadd.f32 %v2358_v0, %v604_v62  ;;  %v154_v62 = vld [vmem:[#allocation2 + $0x90] sm:$0xff] }
  0x48   :  { %v315_v57 = vadd.f32 %v283_v55, %v217_v26  ;;  %v2426_v11 = vmul.f32 %v2236_v50, %v347_v52  ;;  %1060 = vst.msk [vmem:[#allocation2 + $0x49] sm:$0xff] %vm29_vm0, %v1028_v61  ;;  %v186_v39 = vmul.f32 %v2166_v12, %v153_v53  ;;  %v284_v60 = vmul.f32 %v2169_v13, %v251_v30  ;;  %v252_v0 = vld [vmem:[#allocation2 + $0x91] sm:$0xff] }
  0x49   :  { %v607_v24 = vadd.f32 %v575_v8, %v509_v37  ;;  %v381_v4 = vmul.f32 %v2181_v16, %v348_v59  ;;  %v900_v41 = vadd.f32 %v868_v32, %v802_v33  ;;  %v478_v46 = vmul.f32 %v2204_v27, %v153_v53  ;;  %v349_v32 = vld [vmem:[#allocation2 + $0x82] sm:$0xff] }
  0x4a   :  { %v576_v18 = vmul.f32 %v2207_v28, %v251_v30  ;;  %v673_v25 = vmul.f32 %v2226_v43, %v348_v59  ;;  %v218_v52 = vadd.f32 %v186_v39, %v2197_v20  ;;  %v771_v40 = vmul.f32 %v2210_v29, %v153_v53  ;;  %v759_v6 = vld [vmem:[#allocation2 + $0x180] sm:$0xff] }
  0x4b   :  { %v413_v55 = vadd.f32 %v381_v4, %v315_v57  ;;  %v2438_v8 = vmul.f32 %v2217_v35, %v251_v30  ;;  %v966_v45 = vmul.f32 %v2236_v50, %v348_v59  ;;  %v412_v61 = vadd.f32 %v380_v34, %v314_v38  ;;  %v350_v4 = vld [vmem:[#allocation2 + $0x92] sm:$0xff] }
  0x4c   :  { %v705_v26 = vadd.f32 %v673_v25, %v607_v24  ;;  %v606_v37 = vadd.f32 %v574_v54, %v508_v10  ;;  %v316_v33 = vadd.f32 %v284_v60, %v218_v52  ;;  %v801_v49 = vadd.f32 %v769_v5, %v702_v58  ;;  %v155_v60 = vld [vmem:[#allocation2 + $0x98] sm:$0xff] }
  0x4d   :  { %v187_v7 = vmul.f32 %v2166_v12, %v154_v62  ;;  %v285_v36 = vmul.f32 %v2169_v13, %v252_v0  ;;  %v998_v17 = vadd.f32 %v966_v45, %v900_v41  ;;  %v479_v57 = vmul.f32 %v2204_v27, %v154_v62  ;;  %v253_v5 = vld [vmem:[#allocation2 + $0x99] sm:$0xff] }
  0x4e   :  { %v577_v53 = vmul.f32 %v2207_v28, %v252_v0  ;;  %v772_v30 = vmul.f32 %v2210_v29, %v154_v62  ;;  %v870_v59 = vmul.f32 %v2217_v35, %v252_v0  ;;  %v382_v38 = vmul.f32 %v2181_v16, %v349_v32 }
  0x4f   :  { %v219_v24 = vadd.f32 %v187_v7, %v2197_v20  ;;  %v510_v54 = vadd.f32 %v478_v46, %v412_v61  ;;  %v1030_v34 = vmax.f32 %v998_v17, 0.0  ;;  %v511_v10 = vadd.f32 %v479_v57, %v413_v55  ;;  %v156_v61 = vld [vmem:[#allocation2 + $0xa8] sm:$0xff] }
  0x50   :  { %v804_v58 = vadd.f32 %v772_v30, %v705_v26  ;;  %v674_v39 = vmul.f32 %v2226_v43, %v349_v32  ;;  %v704_v25 = vadd.f32 %v672_v56, %v606_v37  ;;  %v899_v52 = vadd.f32 %v2411_v15, %v801_v49  ;;  %v254_v37 = vld [vmem:[#allocation2 + $0xa9] sm:$0xff]  ;;  %v351_v30 = vld [vmem:[#allocation2 + $0x9a] sm:$0xff] }
  0x51   :  { %v317_v41 = vadd.f32 %v285_v36, %v219_v24  ;;  %v2452_v62 = vmul.f32 %v2236_v50, %v349_v32  ;;  %1062 = vst.msk [vmem:[#allocation2 + $0x61] sm:$0xff] %vm29_vm0, %v1030_v34  ;;  %v609_v7 = vadd.f32 %v577_v53, %v511_v10  ;;  %v188_v46 = vmul.f32 %v2166_v12, %v155_v60 }
  0x52   :  { %v902_v0 = vadd.f32 %v870_v59, %v804_v58  ;;  %v286_v17 = vmul.f32 %v2169_v13, %v253_v5  ;;  %v383_v55 = vmul.f32 %v2181_v16, %v350_v4  ;;  %v480_v26 = vmul.f32 %v2204_v27, %v155_v60 }
  0x53   :  { %v578_v36 = vmul.f32 %v2207_v28, %v253_v5  ;;  %v675_v56 = vmul.f32 %v2226_v43, %v350_v4  ;;  %v220_v49 = vadd.f32 %v188_v46, %v2197_v20  ;;  %v773_v15 = vmul.f32 %v2210_v29, %v155_v60 }
  0x54   :  { %v2464_v45 = vmul.f32 %v2217_v35, %v253_v5  ;;  %v968_v32 = vmul.f32 %v2236_v50, %v350_v4  ;;  %v415_v57 = vadd.f32 %v383_v55, %v317_v41  ;;  %v414_v24 = vadd.f32 %v382_v38, %v316_v33  ;;  %v157_v33 = vld [vmem:[#allocation2 + $0xb0] sm:$0xff] }
  0x55   :  { %v707_v53 = vadd.f32 %v675_v56, %v609_v7  ;;  %v608_v59 = vadd.f32 %v576_v18, %v510_v54  ;;  %v318_v34 = vadd.f32 %v286_v17, %v220_v49  ;;  %v803_v58 = vadd.f32 %v771_v40, %v704_v25  ;;  %v255_v25 = vld [vmem:[#allocation2 + $0xb1] sm:$0xff] }
  0x56   :  { %v1000_v10 = vadd.f32 %v968_v32, %v902_v0  ;;  %v997_v48 = vadd.f32 %v2426_v11, %v899_v52  ;;  %v189_v46 = vmul.f32 %v2166_v12, %v156_v61  ;;  %v287_v60 = vmul.f32 %v2169_v13, %v254_v37  ;;  %v352_v52 = vld [vmem:[#allocation2 + $0xaa] sm:$0xff] }
  0x57   :  { %v481_v5 = vmul.f32 %v2204_v27, %v156_v61  ;;  %v579_v4 = vmul.f32 %v2207_v28, %v254_v37  ;;  %v774_v41 = vmul.f32 %v2210_v29, %v156_v61  ;;  %v872_v7 = vmul.f32 %v2217_v35, %v254_v37 }
  0x58   :  { %v1032_v51 = vmax.f32 %v1000_v10, 0.0  ;;  %v384_v18 = vmul.f32 %v2181_v16, %v351_v30  ;;  %v221_v40 = vadd.f32 %v189_v46, %v2197_v20  ;;  %v512_v11 = vadd.f32 %v480_v26, %v414_v24 }
  0x59   :  { %v513_v38 = vadd.f32 %v481_v5, %v415_v57  ;;  %v676_v54 = vmul.f32 %v2226_v43, %v351_v30  ;;  %v806_v0 = vadd.f32 %v774_v41, %v707_v53  ;;  %v706_v17 = vadd.f32 %v674_v39, %v608_v59  ;;  %v353_v41 = vld [vmem:[#allocation2 + $0xb2] sm:$0xff] }
  0x5a   :  { %1064 = vst.msk [vmem:[#allocation2 + $0x79] sm:$0xff] %vm29_vm0, %v1032_v51  ;;  %v901_v55 = vadd.f32 %v2438_v8, %v803_v58  ;;  %v2480_v56 = vmul.f32 %v2236_v50, %v351_v30  ;;  %v319_v49 = vadd.f32 %v287_v60, %v221_v40  ;;  %v1029_v61 = vmax.f32 %v997_v48, 0.0  ;;  %v158_v48 = vld [vmem:[#allocation2 + $0xc0] sm:$0xff] }
  0x5b   :  { %v611_v32 = vadd.f32 %v579_v4, %v513_v38  ;;  %v190_v37 = vmul.f32 %v2166_v12, %v157_v33  ;;  %v904_v57 = vadd.f32 %v872_v7, %v806_v0  ;;  %v288_v26 = vmul.f32 %v2169_v13, %v255_v25  ;;  %v256_v30 = vld [vmem:[#allocation2 + $0xc1] sm:$0xff] }
  0x5c   :  { %v385_v24 = vmul.f32 %v2181_v16, %v352_v52  ;;  %v482_v10 = vmul.f32 %v2204_v27, %v157_v33  ;;  %v580_v39 = vmul.f32 %v2207_v28, %v255_v25  ;;  %v677_v8 = vmul.f32 %v2226_v43, %v352_v52  ;;  %1061 = vst.msk [vmem:[#allocation2 + $0x51] sm:$0xff] %vm29_vm0, %v1029_v61 }
  0x5d   :  { %v222_v51 = vadd.f32 %v190_v37, %v2197_v20  ;;  %v775_v53 = vmul.f32 %v2210_v29, %v157_v33  ;;  %v2492_v58 = vmul.f32 %v2217_v35, %v255_v25  ;;  %v970_v46 = vmul.f32 %v2236_v50, %v352_v52 }
  0x5e   :  { %v417_v59 = vadd.f32 %v385_v24, %v319_v49  ;;  %v416_v60 = vadd.f32 %v384_v18, %v318_v34  ;;  %v709_v4 = vadd.f32 %v677_v8, %v611_v32  ;;  %v610_v7 = vadd.f32 %v578_v36, %v512_v11  ;;  %v159_v11 = vld [vmem:[#allocation2 + $0xc8] sm:$0xff] }
  0x5f   :  { %v320_v5 = vadd.f32 %v288_v26, %v222_v51  ;;  %v805_v40 = vadd.f32 %v773_v15, %v706_v17  ;;  %v1002_v38 = vadd.f32 %v970_v46, %v904_v57  ;;  %v999_v0 = vadd.f32 %v2452_v62, %v901_v55  ;;  %v257_v62 = vld [vmem:[#allocation2 + $0xc9] sm:$0xff] }
  0x60   :  { %v191_v33 = vmul.f32 %v2166_v12, %v158_v48  ;;  %v289_v61 = vmul.f32 %v2169_v13, %v256_v30  ;;  %v483_v49 = vmul.f32 %v2204_v27, %v158_v48  ;;  %v581_v25 = vmul.f32 %v2207_v28, %v256_v30  ;;  %v354_v26 = vld [vmem:[#allocation2 + $0xc2] sm:$0xff] }
  0x61   :  { %v776_v37 = vmul.f32 %v2210_v29, %v158_v48  ;;  %v874_v34 = vmul.f32 %v2217_v35, %v256_v30  ;;  %v1034_v18 = vmax.f32 %v1002_v38, 0.0  ;;  %v386_v36 = vmul.f32 %v2181_v16, %v353_v41 }
  0x62   :  { %v223_v52 = vadd.f32 %v191_v33, %v2197_v20  ;;  %v514_v15 = vadd.f32 %v482_v10, %v416_v60  ;;  %v515_v17 = vadd.f32 %v483_v49, %v417_v59  ;;  %v678_v32 = vmul.f32 %v2226_v43, %v353_v41  ;;  %v258_v33 = vld [vmem:[#allocation2 + $0xd9] sm:$0xff] }
  0x63   :  { %v808_v55 = vadd.f32 %v776_v37, %v709_v4  ;;  %v708_v57 = vadd.f32 %v676_v54, %v610_v7  ;;  %1066 = vst.msk [vmem:[#allocation2 + $0x91] sm:$0xff] %vm29_vm0, %v1034_v18  ;;  %v903_v51 = vadd.f32 %v2464_v45, %v805_v40  ;;  %v2508_v8 = vmul.f32 %v2236_v50, %v353_v41 }
  0x64   :  { %v321_v24 = vadd.f32 %v289_v61, %v223_v52  ;;  %v1031_v48 = vmax.f32 %v999_v0, 0.0  ;;  %v613_v30 = vadd.f32 %v581_v25, %v515_v17  ;;  %v192_v10 = vmul.f32 %v2166_v12, %v159_v11  ;;  %v160_v0 = vld [vmem:[#allocation2 + $0xd8] sm:$0xff]  ;;  %v355_v25 = vld [vmem:[#allocation2 + $0xca] sm:$0xff] }
  0x65   :  { %v906_v46 = vadd.f32 %v874_v34, %v808_v55  ;;  %v290_v59 = vmul.f32 %v2169_v13, %v257_v62  ;;  %v387_v60 = vmul.f32 %v2181_v16, %v354_v26  ;;  %v484_v54 = vmul.f32 %v2204_v27, %v159_v11 }
  0x66   :  { %v582_v4 = vmul.f32 %v2207_v28, %v257_v62  ;;  %v679_v7 = vmul.f32 %v2226_v43, %v354_v26  ;;  %1063 = vst.msk [vmem:[#allocation2 + $0x69] sm:$0xff] %vm29_vm0, %v1031_v48  ;;  %v224_v45 = vadd.f32 %v192_v10, %v2197_v20  ;;  %v777_v41 = vmul.f32 %v2210_v29, %v159_v11 }
  0x67   :  { %v2520_v40 = vmul.f32 %v2217_v35, %v257_v62  ;;  %v972_v38 = vmul.f32 %v2236_v50, %v354_v26  ;;  %v419_v61 = vadd.f32 %v387_v60, %v321_v24  ;;  %v418_v37 = vadd.f32 %v386_v36, %v320_v5  ;;  %v161_v5 = vld [vmem:[#allocation2 + $0xe0] sm:$0xff] }
  0x68   :  { %v711_v49 = vadd.f32 %v679_v7, %v613_v30  ;;  %v612_v34 = vadd.f32 %v580_v39, %v514_v15  ;;  %v322_v18 = vadd.f32 %v290_v59, %v224_v45  ;;  %v807_v17 = vadd.f32 %v775_v53, %v708_v57  ;;  %v259_v57 = vld [vmem:[#allocation2 + $0xe1] sm:$0xff] }
  0x69   :  { %v1004_v52 = vadd.f32 %v972_v38, %v906_v46  ;;  %v1001_v55 = vadd.f32 %v2480_v56, %v903_v51  ;;  %v193_v48 = vmul.f32 %v2166_v12, %v160_v0  ;;  %v291_v11 = vmul.f32 %v2169_v13, %v258_v33  ;;  %v356_v51 = vld [vmem:[#allocation2 + $0xda] sm:$0xff] }
  0x6a   :  { %v485_v62 = vmul.f32 %v2204_v27, %v160_v0  ;;  %v583_v26 = vmul.f32 %v2207_v28, %v258_v33  ;;  %v778_v24 = vmul.f32 %v2210_v29, %v160_v0  ;;  %v876_v30 = vmul.f32 %v2217_v35, %v258_v33 }
  0x6b   :  { %v1036_v10 = vmax.f32 %v1004_v52, 0.0  ;;  %v388_v39 = vmul.f32 %v2181_v16, %v355_v25  ;;  %v225_v53 = vadd.f32 %v193_v48, %v2197_v20  ;;  %v516_v56 = vadd.f32 %v484_v54, %v418_v37 }
  0x6c   :  { %v517_v36 = vadd.f32 %v485_v62, %v419_v61  ;;  %v680_v15 = vmul.f32 %v2226_v43, %v355_v25  ;;  %v810_v46 = vadd.f32 %v778_v24, %v711_v49  ;;  %v710_v59 = vadd.f32 %v678_v32, %v612_v34  ;;  %v162_v34 = vld [vmem:[#allocation2 + $0xf0] sm:$0xff]  ;;  %v357_v24 = vld [vmem:[#allocation2 + $0xe2] sm:$0xff] }
  0x6d   :  { %1068 = vst.msk [vmem:[#allocation2 + $0xa9] sm:$0xff] %vm29_vm0, %v1036_v10  ;;  %v905_v60 = vadd.f32 %v2492_v58, %v807_v17  ;;  %v2536_v7 = vmul.f32 %v2236_v50, %v355_v25  ;;  %v323_v45 = vadd.f32 %v291_v11, %v225_v53  ;;  %v1033_v0 = vmax.f32 %v1001_v55, 0.0  ;;  %v260_v17 = vld [vmem:[#allocation2 + $0xf1] sm:$0xff] }
  0x6e   :  { %v615_v38 = vadd.f32 %v583_v26, %v517_v36  ;;  %v194_v33 = vmul.f32 %v2166_v12, %v161_v5  ;;  %v908_v61 = vadd.f32 %v876_v30, %v810_v46  ;;  %v292_v54 = vmul.f32 %v2169_v13, %v259_v57 }
  0x6f   :  { %v389_v37 = vmul.f32 %v2181_v16, %v356_v51  ;;  %v486_v52 = vmul.f32 %v2204_v27, %v161_v5  ;;  %v584_v32 = vmul.f32 %v2207_v28, %v259_v57  ;;  %v681_v58 = vmul.f32 %v2226_v43, %v356_v51  ;;  %1065 = vst.msk [vmem:[#allocation2 + $0x81] sm:$0xff] %vm29_vm0, %v1033_v0 }
  0x70   :  { %v226_v49 = vadd.f32 %v194_v33, %v2197_v20  ;;  %v779_v25 = vmul.f32 %v2210_v29, %v161_v5  ;;  %v2548_v48 = vmul.f32 %v2217_v35, %v259_v57  ;;  %v974_v11 = vmul.f32 %v2236_v50, %v356_v51 }
  0x71   :  { %v421_v55 = vadd.f32 %v389_v37, %v323_v45  ;;  %v420_v62 = vadd.f32 %v388_v39, %v322_v18  ;;  %v713_v10 = vadd.f32 %v681_v58, %v615_v38  ;;  %v614_v30 = vadd.f32 %v582_v4, %v516_v56  ;;  %v163_v56 = vld [vmem:[#allocation2 + $0xf8] sm:$0xff] }
  0x72   :  { %v324_v26 = vadd.f32 %v292_v54, %v226_v49  ;;  %v809_v53 = vadd.f32 %v777_v41, %v710_v59  ;;  %v1006_v36 = vadd.f32 %v974_v11, %v908_v61  ;;  %v1003_v46 = vadd.f32 %v2508_v8, %v905_v60  ;;  %v261_v8 = vld [vmem:[#allocation2 + $0xf9] sm:$0xff] }
  0x73   :  { %v195_v5 = vmul.f32 %v2166_v12, %v162_v34  ;;  %v293_v0 = vmul.f32 %v2169_v13, %v260_v17  ;;  %v487_v45 = vmul.f32 %v2204_v27, %v162_v34  ;;  %v585_v57 = vmul.f32 %v2207_v28, %v260_v17  ;;  %v358_v54 = vld [vmem:[#allocation2 + $0xf2] sm:$0xff] }
  0x74   :  { %v780_v33 = vmul.f32 %v2210_v29, %v162_v34  ;;  %v878_v18 = vmul.f32 %v2217_v35, %v260_v17  ;;  %v1038_v39 = vmax.f32 %v1006_v36, 0.0  ;;  %v390_v4 = vmul.f32 %v2181_v16, %v357_v24 }
  0x75   :  { %v227_v51 = vadd.f32 %v195_v5, %v2197_v20  ;;  %v518_v41 = vadd.f32 %v486_v52, %v420_v62  ;;  %v519_v59 = vadd.f32 %v487_v45, %v421_v55  ;;  %v682_v38 = vmul.f32 %v2226_v43, %v357_v24  ;;  %v262_v5 = vld [vmem:[#allocation2 + $0x109] sm:$0xff] }
  0x76   :  { %v812_v60 = vadd.f32 %v780_v33, %v713_v10  ;;  %v712_v61 = vadd.f32 %v680_v15, %v614_v30  ;;  %1070 = vst.msk [vmem:[#allocation2 + $0xc1] sm:$0xff] %vm29_vm0, %v1038_v39  ;;  %v907_v49 = vadd.f32 %v2520_v40, %v809_v53  ;;  %v2564_v58 = vmul.f32 %v2236_v50, %v357_v24 }
  0x77   :  { %v325_v37 = vadd.f32 %v293_v0, %v227_v51  ;;  %v1035_v34 = vmax.f32 %v1003_v46, 0.0  ;;  %v617_v17 = vadd.f32 %v585_v57, %v519_v59  ;;  %v196_v52 = vmul.f32 %v2166_v12, %v163_v56  ;;  %v164_v46 = vld [vmem:[#allocation2 + $0x108] sm:$0xff]  ;;  %v359_v57 = vld [vmem:[#allocation2 + $0xfa] sm:$0xff] }
  0x78   :  { %v910_v11 = vadd.f32 %v878_v18, %v812_v60  ;;  %v294_v55 = vmul.f32 %v2169_v13, %v261_v8  ;;  %v391_v62 = vmul.f32 %v2181_v16, %v358_v54  ;;  %v488_v15 = vmul.f32 %v2204_v27, %v163_v56 }
  0x79   :  { %v586_v10 = vmul.f32 %v2207_v28, %v261_v8  ;;  %v683_v30 = vmul.f32 %v2226_v43, %v358_v54  ;;  %1067 = vst.msk [vmem:[#allocation2 + $0x99] sm:$0xff] %vm29_vm0, %v1035_v34  ;;  %v228_v40 = vadd.f32 %v196_v52, %v2197_v20  ;;  %v781_v24 = vmul.f32 %v2210_v29, %v163_v56 }
  0x7a   :  { %v2576_v53 = vmul.f32 %v2217_v35, %v261_v8  ;;  %v976_v36 = vmul.f32 %v2236_v50, %v358_v54  ;;  %v423_v0 = vadd.f32 %v391_v62, %v325_v37  ;;  %v422_v33 = vadd.f32 %v390_v4, %v324_v26  ;;  %v165_v26 = vld [vmem:[#allocation2 + $0x110] sm:$0xff] }
  0x7b   :  { %v715_v45 = vadd.f32 %v683_v30, %v617_v17  ;;  %v616_v18 = vadd.f32 %v584_v32, %v518_v41  ;;  %v326_v39 = vadd.f32 %v294_v55, %v228_v40  ;;  %v811_v59 = vadd.f32 %v779_v25, %v712_v61  ;;  %v263_v61 = vld [vmem:[#allocation2 + $0x111] sm:$0xff] }
  0x7c   :  { %v1008_v51 = vadd.f32 %v976_v36, %v910_v11  ;;  %v1005_v60 = vadd.f32 %v2536_v7, %v907_v49  ;;  %v197_v34 = vmul.f32 %v2166_v12, %v164_v46  ;;  %v295_v56 = vmul.f32 %v2169_v13, %v262_v5  ;;  %v360_v49 = vld [vmem:[#allocation2 + $0x10a] sm:$0xff] }
  0x7d   :  { %v489_v8 = vmul.f32 %v2204_v27, %v164_v46  ;;  %v587_v54 = vmul.f32 %v2207_v28, %v262_v5  ;;  %v782_v37 = vmul.f32 %v2210_v29, %v164_v46  ;;  %v880_v17 = vmul.f32 %v2217_v35, %v262_v5 }
  0x7e   :  { %v1040_v52 = vmax.f32 %v1008_v51, 0.0  ;;  %v392_v32 = vmul.f32 %v2181_v16, %v359_v57  ;;  %v229_v25 = vadd.f32 %v197_v34, %v2197_v20  ;;  %v520_v7 = vadd.f32 %v488_v15, %v422_v33 }
  0x7f   :  { %v521_v4 = vadd.f32 %v489_v8, %v423_v0  ;;  %v684_v41 = vmul.f32 %v2226_v43, %v359_v57  ;;  %v814_v11 = vadd.f32 %v782_v37, %v715_v45  ;;  %v714_v55 = vadd.f32 %v682_v38, %v616_v18  ;;  %v166_v18 = vld [vmem:[#allocation2 + $0x120] sm:$0xff]  ;;  %v361_v37 = vld [vmem:[#allocation2 + $0x112] sm:$0xff] }
  0x80   :  { %1072 = vst.msk [vmem:[#allocation2 + $0xd9] sm:$0xff] %vm29_vm0, %v1040_v52  ;;  %v909_v62 = vadd.f32 %v2548_v48, %v811_v59  ;;  %v2592_v30 = vmul.f32 %v2236_v50, %v359_v57  ;;  %v327_v40 = vadd.f32 %v295_v56, %v229_v25  ;;  %v1037_v46 = vmax.f32 %v1005_v60, 0.0  ;;  %v264_v59 = vld [vmem:[#allocation2 + $0x121] sm:$0xff] }
  0x81   :  { %v619_v36 = vadd.f32 %v587_v54, %v521_v4  ;;  %v198_v5 = vmul.f32 %v2166_v12, %v165_v26  ;;  %v912_v0 = vadd.f32 %v880_v17, %v814_v11  ;;  %v296_v15 = vmul.f32 %v2169_v13, %v263_v61 }
  0x82   :  { %v393_v33 = vmul.f32 %v2181_v16, %v360_v49  ;;  %v490_v51 = vmul.f32 %v2204_v27, %v165_v26  ;;  %v588_v38 = vmul.f32 %v2207_v28, %v263_v61  ;;  %v685_v48 = vmul.f32 %v2226_v43, %v360_v49  ;;  %1069 = vst.msk [vmem:[#allocation2 + $0xb1] sm:$0xff] %vm29_vm0, %v1037_v46 }
  0x83   :  { %v230_v45 = vadd.f32 %v198_v5, %v2197_v20  ;;  %v783_v57 = vmul.f32 %v2210_v29, %v165_v26  ;;  %v2604_v34 = vmul.f32 %v2217_v35, %v263_v61  ;;  %v978_v56 = vmul.f32 %v2236_v50, %v360_v49 }
  0x84   :  { %v425_v60 = vadd.f32 %v393_v33, %v327_v40  ;;  %v424_v8 = vadd.f32 %v392_v32, %v326_v39  ;;  %v717_v52 = vadd.f32 %v685_v48, %v619_v36  ;;  %v618_v17 = vadd.f32 %v586_v10, %v520_v7  ;;  %v167_v7 = vld [vmem:[#allocation2 + $0x128] sm:$0xff] }
  0x85   :  { %v328_v54 = vadd.f32 %v296_v15, %v230_v45  ;;  %v813_v25 = vadd.f32 %v781_v24, %v714_v55  ;;  %v1010_v4 = vadd.f32 %v978_v56, %v912_v0  ;;  %v1007_v11 = vadd.f32 %v2564_v58, %v909_v62  ;;  %v265_v58 = vld [vmem:[#allocation2 + $0x129] sm:$0xff] }
  0x86   :  { %v199_v26 = vmul.f32 %v2166_v12, %v166_v18  ;;  %v297_v46 = vmul.f32 %v2169_v13, %v264_v59  ;;  %v491_v40 = vmul.f32 %v2204_v27, %v166_v18  ;;  %v589_v61 = vmul.f32 %v2207_v28, %v264_v59  ;;  %v362_v15 = vld [vmem:[#allocation2 + $0x122] sm:$0xff] }
  0x87   :  { %v784_v5 = vmul.f32 %v2210_v29, %v166_v18  ;;  %v882_v39 = vmul.f32 %v2217_v35, %v264_v59  ;;  %v1042_v32 = vmax.f32 %v1010_v4, 0.0  ;;  %v394_v10 = vmul.f32 %v2181_v16, %v361_v37 }
  0x88   :  { %v231_v49 = vadd.f32 %v199_v26, %v2197_v20  ;;  %v522_v24 = vadd.f32 %v490_v51, %v424_v8  ;;  %v523_v55 = vadd.f32 %v491_v40, %v425_v60  ;;  %v686_v36 = vmul.f32 %v2226_v43, %v361_v37  ;;  %v266_v26 = vld [vmem:[#allocation2 + $0x139] sm:$0xff] }
  0x89   :  { %v816_v62 = vadd.f32 %v784_v5, %v717_v52  ;;  %v716_v0 = vadd.f32 %v684_v41, %v618_v17  ;;  %1074 = vst.msk [vmem:[#allocation2 + $0xf1] sm:$0xff] %vm29_vm0, %v1042_v32  ;;  %v911_v45 = vadd.f32 %v2576_v53, %v813_v25  ;;  %v2620_v48 = vmul.f32 %v2236_v50, %v361_v37 }
  0x8a   :  { %v329_v33 = vadd.f32 %v297_v46, %v231_v49  ;;  %v1039_v18 = vmax.f32 %v1007_v11, 0.0  ;;  %v621_v59 = vadd.f32 %v589_v61, %v523_v55  ;;  %v200_v51 = vmul.f32 %v2166_v12, %v167_v7  ;;  %v168_v11 = vld [vmem:[#allocation2 + $0x138] sm:$0xff]  ;;  %v363_v61 = vld [vmem:[#allocation2 + $0x12a] sm:$0xff] }
  0x8b   :  { %v914_v56 = vadd.f32 %v882_v39, %v816_v62  ;;  %v298_v60 = vmul.f32 %v2169_v13, %v265_v58  ;;  %v395_v8 = vmul.f32 %v2181_v16, %v362_v15  ;;  %v492_v41 = vmul.f32 %v2204_v27, %v167_v7 }
  0x8c   :  { %v590_v52 = vmul.f32 %v2207_v28, %v265_v58  ;;  %v687_v17 = vmul.f32 %v2226_v43, %v362_v15  ;;  %1071 = vst.msk [vmem:[#allocation2 + $0xc9] sm:$0xff] %vm29_vm0, %v1039_v18  ;;  %v232_v53 = vadd.f32 %v200_v51, %v2197_v20  ;;  %v785_v37 = vmul.f32 %v2210_v29, %v167_v7 }
  0x8d   :  { %v2632_v25 = vmul.f32 %v2217_v35, %v265_v58  ;;  %v980_v4 = vmul.f32 %v2236_v50, %v362_v15  ;;  %v427_v46 = vadd.f32 %v395_v8, %v329_v33  ;;  %v426_v5 = vadd.f32 %v394_v10, %v328_v54  ;;  %v169_v54 = vld [vmem:[#allocation2 + $0x140] sm:$0xff] }
  0x8e   :  { %v719_v40 = vadd.f32 %v687_v17, %v621_v59  ;;  %v620_v39 = vadd.f32 %v588_v38, %v522_v24  ;;  %v330_v32 = vadd.f32 %v298_v60, %v232_v53  ;;  %v815_v55 = vadd.f32 %v783_v57, %v716_v0  ;;  %v267_v0 = vld [vmem:[#allocation2 + $0x141] sm:$0xff] }
  0x8f   :  { %v1012_v49 = vadd.f32 %v980_v4, %v914_v56  ;;  %v1009_v62 = vadd.f32 %v2592_v30, %v911_v45  ;;  %v201_v18 = vmul.f32 %v2166_v12, %v168_v11  ;;  %v299_v7 = vmul.f32 %v2169_v13, %v266_v26  ;;  %v364_v45 = vld [vmem:[#allocation2 + $0x13a] sm:$0xff] }
  0x90   :  { %v493_v58 = vmul.f32 %v2204_v27, %v168_v11  ;;  %v591_v15 = vmul.f32 %v2207_v28, %v266_v26  ;;  %v786_v33 = vmul.f32 %v2210_v29, %v168_v11  ;;  %v884_v59 = vmul.f32 %v2217_v35, %v266_v26 }
  0x91   :  { %v1044_v51 = vmax.f32 %v1012_v49, 0.0  ;;  %v396_v38 = vmul.f32 %v2181_v16, %v363_v61  ;;  %v233_v57 = vadd.f32 %v201_v18, %v2197_v20  ;;  %v524_v30 = vadd.f32 %v492_v41, %v426_v5 }
  0x92   :  { %v525_v10 = vadd.f32 %v493_v58, %v427_v46  ;;  %v688_v24 = vmul.f32 %v2226_v43, %v363_v61  ;;  %v818_v56 = vadd.f32 %v786_v33, %v719_v40  ;;  %v718_v60 = vadd.f32 %v686_v36, %v620_v39  ;;  %v170_v39 = vld [vmem:[#allocation2 + $0x150] sm:$0xff]  ;;  %v365_v33 = vld [vmem:[#allocation2 + $0x142] sm:$0xff] }
  0x93   :  { %1076 = vst.msk [vmem:[#allocation2 + $0x109] sm:$0xff] %vm29_vm0, %v1044_v51  ;;  %v913_v8 = vadd.f32 %v2604_v34, %v815_v55  ;;  %v2648_v17 = vmul.f32 %v2236_v50, %v363_v61  ;;  %v331_v53 = vadd.f32 %v299_v7, %v233_v57  ;;  %v1041_v11 = vmax.f32 %v1009_v62, 0.0  ;;  %v268_v55 = vld [vmem:[#allocation2 + $0x151] sm:$0xff] }
  0x94   :  { %v623_v4 = vadd.f32 %v591_v15, %v525_v10  ;;  %v202_v26 = vmul.f32 %v2166_v12, %v169_v54  ;;  %v916_v46 = vadd.f32 %v884_v59, %v818_v56  ;;  %v300_v41 = vmul.f32 %v2169_v13, %v267_v0 }
  0x95   :  { %v397_v5 = vmul.f32 %v2181_v16, %v364_v45  ;;  %v494_v49 = vmul.f32 %v2204_v27, %v169_v54  ;;  %v592_v36 = vmul.f32 %v2207_v28, %v267_v0  ;;  %v689_v34 = vmul.f32 %v2226_v43, %v364_v45  ;;  %1073 = vst.msk [vmem:[#allocation2 + $0xe1] sm:$0xff] %vm29_vm0, %v1041_v11 }
  0x96   :  { %v234_v40 = vadd.f32 %v202_v26, %v2197_v20  ;;  %v787_v61 = vmul.f32 %v2210_v29, %v169_v54  ;;  %v2660_v18 = vmul.f32 %v2217_v35, %v267_v0  ;;  %v982_v7 = vmul.f32 %v2236_v50, %v364_v45 }
  0x97   :  { %v429_v62 = vadd.f32 %v397_v5, %v331_v53  ;;  %v428_v58 = vadd.f32 %v396_v38, %v330_v32  ;;  %v721_v51 = vadd.f32 %v689_v34, %v623_v4  ;;  %v622_v59 = vadd.f32 %v590_v52, %v524_v30  ;;  %v171_v30 = vld [vmem:[#allocation2 + $0x158] sm:$0xff] }
  0x98   :  { %v332_v15 = vadd.f32 %v300_v41, %v234_v40  ;;  %v817_v57 = vadd.f32 %v785_v37, %v718_v60  ;;  %v1014_v10 = vadd.f32 %v982_v7, %v916_v46  ;;  %v1011_v56 = vadd.f32 %v2620_v48, %v913_v8  ;;  %v269_v48 = vld [vmem:[#allocation2 + $0x159] sm:$0xff] }
  0x99   :  { %v203_v54 = vmul.f32 %v2166_v12, %v170_v39  ;;  %v301_v11 = vmul.f32 %v2169_v13, %v268_v55  ;;  %v495_v53 = vmul.f32 %v2204_v27, %v170_v39  ;;  %v593_v0 = vmul.f32 %v2207_v28, %v268_v55  ;;  %v366_v41 = vld [vmem:[#allocation2 + $0x152] sm:$0xff] }
  0x9a   :  { %v788_v26 = vmul.f32 %v2210_v29, %v170_v39  ;;  %v886_v32 = vmul.f32 %v2217_v35, %v268_v55  ;;  %v1046_v38 = vmax.f32 %v1014_v10, 0.0  ;;  %v398_v52 = vmul.f32 %v2181_v16, %v365_v33 }
  0x9b   :  { %v235_v45 = vadd.f32 %v203_v54, %v2197_v20  ;;  %v526_v37 = vadd.f32 %v494_v49, %v428_v58  ;;  %v527_v60 = vadd.f32 %v495_v53, %v429_v62  ;;  %v690_v4 = vmul.f32 %v2226_v43, %v365_v33  ;;  %v270_v54 = vld [vmem:[#allocation2 + $0x169] sm:$0xff] }
  0x9c   :  { %v820_v8 = vadd.f32 %v788_v26, %v721_v51  ;;  %v720_v46 = vadd.f32 %v688_v24, %v622_v59  ;;  %1078 = vst.msk [vmem:[#allocation2 + $0x121] sm:$0xff] %vm29_vm0, %v1046_v38  ;;  %v915_v40 = vadd.f32 %v2632_v25, %v817_v57  ;;  %v2676_v34 = vmul.f32 %v2236_v50, %v365_v33 }
  0x9d   :  { %v333_v5 = vadd.f32 %v301_v11, %v235_v45  ;;  %v1043_v39 = vmax.f32 %v1011_v56, 0.0  ;;  %v625_v55 = vadd.f32 %v593_v0, %v527_v60  ;;  %v204_v49 = vmul.f32 %v2166_v12, %v171_v30  ;;  %v172_v56 = vld [vmem:[#allocation2 + $0x168] sm:$0xff]  ;;  %v367_v0 = vld [vmem:[#allocation2 + $0x15a] sm:$0xff] }
  0x9e   :  { %v918_v7 = vadd.f32 %v886_v32, %v820_v8  ;;  %v302_v62 = vmul.f32 %v2169_v13, %v269_v48  ;;  %v399_v58 = vmul.f32 %v2181_v16, %v366_v41  ;;  %v496_v24 = vmul.f32 %v2204_v27, %v171_v30 }
  0x9f   :  { %v594_v51 = vmul.f32 %v2207_v28, %v269_v48  ;;  %v691_v59 = vmul.f32 %v2226_v43, %v366_v41  ;;  %1075 = vst.msk [vmem:[#allocation2 + $0xf9] sm:$0xff] %vm29_vm0, %v1043_v39  ;;  %v236_v25 = vadd.f32 %v204_v49, %v2197_v20  ;;  %v789_v33 = vmul.f32 %v2210_v29, %v171_v30 }
  0xa0   :  { %v887_v57 = vmul.f32 %v2217_v35, %v269_v48  ;;  %v984_v10 = vmul.f32 %v2236_v50, %v366_v41  ;;  %v431_v11 = vadd.f32 %v399_v58, %v333_v5  ;;  %v430_v26 = vadd.f32 %v398_v52, %v332_v15  ;;  %v173_v15 = vld [vmem:[#allocation2 + $0x170] sm:$0xff] }
  0xa1   :  { %v723_v53 = vadd.f32 %v691_v59, %v625_v55  ;;  %v624_v32 = vadd.f32 %v592_v36, %v526_v37  ;;  %v334_v38 = vadd.f32 %v302_v62, %v236_v25  ;;  %v819_v60 = vadd.f32 %v787_v61, %v720_v46  ;;  %v271_v46 = vld [vmem:[#allocation2 + $0x171] sm:$0xff] }
  0xa2   :  { %v1016_v45 = vadd.f32 %v984_v10, %v918_v7  ;;  %v1013_v8 = vadd.f32 %v2648_v17, %v915_v40  ;;  %v205_v39 = vmul.f32 %v2166_v12, %v172_v56  ;;  %v303_v30 = vmul.f32 %v2169_v13, %v270_v54  ;;  %v368_v40 = vld [vmem:[#allocation2 + $0x16a] sm:$0xff] }
  0xa3   :  { %v497_v48 = vmul.f32 %v2204_v27, %v172_v56  ;;  %v595_v41 = vmul.f32 %v2207_v28, %v270_v54  ;;  %v790_v5 = vmul.f32 %v2210_v29, %v172_v56  ;;  %v888_v55 = vmul.f32 %v2217_v35, %v270_v54 }
  0xa4   :  { %v1048_v49 = vmax.f32 %v1016_v45, 0.0  ;;  %v400_v36 = vmul.f32 %v2181_v16, %v367_v0  ;;  %v237_v61 = vadd.f32 %v205_v39, %v2197_v20  ;;  %v528_v17 = vadd.f32 %v496_v24, %v430_v26 }
  0xa5   :  { %v529_v52 = vadd.f32 %v497_v48, %v431_v11  ;;  %v692_v37 = vmul.f32 %v2226_v43, %v367_v0  ;;  %v822_v7 = vadd.f32 %v790_v5, %v723_v53  ;;  %v722_v62 = vadd.f32 %v690_v4, %v624_v32  ;;  %v369_v32 = vld [vmem:[#allocation2 + $0x172] sm:$0xff] }
  0xa6   :  { %1080 = vst.msk [vmem:[#allocation2 + $0x139] sm:$0xff] %vm29_vm0, %v1048_v49  ;;  %v917_v58 = vadd.f32 %v2660_v18, %v819_v60  ;;  %v985_v59 = vmul.f32 %v2236_v50, %v367_v0  ;;  %v2702_v25 = vadd.f32 %v303_v30, %v237_v61  ;;  %v1045_v56 = vmax.f32 %v1013_v8, 0.0 }
  0xa7   :  { %v627_v10 = vadd.f32 %v595_v41, %v529_v52  ;;  %v206_v54 = vmul.f32 %v2166_v12, %v173_v15  ;;  %v920_v11 = vadd.f32 %v888_v55, %v822_v7  ;;  %v304_v24 = vmul.f32 %v2169_v13, %v271_v46 }
  0xa8   :  { %v2707_v26 = vmul.f32 %v2181_v16, %v368_v40  ;;  %v498_v45 = vmul.f32 %v2204_v27, %v173_v15  ;;  %v596_v18 = vmul.f32 %v2207_v28, %v271_v46  ;;  %v693_v53 = vmul.f32 %v2226_v43, %v368_v40  ;;  %1077 = vst.msk [vmem:[#allocation2 + $0x111] sm:$0xff] %vm29_vm0, %v1045_v56 }
  0xa9   :  { %v238_v4 = vadd.f32 %v206_v54, %v2197_v20  ;;  %v791_v0 = vmul.f32 %v2210_v29, %v173_v15  ;;  %v889_v60 = vmul.f32 %v2217_v35, %v271_v46  ;;  %v986_v8 = vmul.f32 %v2236_v50, %v368_v40  ;;  %v145_v40 = vld [vmem:[#allocation2 + $0x20] sm:$0xff] }
  0xaa   :  { %v432_v39 = vadd.f32 %v400_v36, %v334_v38  ;;  %v626_v30 = vadd.f32 %v594_v51, %v528_v17  ;;  %v725_v41 = vadd.f32 %v693_v53, %v627_v10  ;;  %v821_v49 = vadd.f32 %v789_v33, %v722_v62  ;;  %v760_v17 = vld [vmem:[#allocation2 + $0x188] sm:$0xff] }
  0xab   :  { %v336_v48 = vadd.f32 %v304_v24, %v238_v4  ;;  %v1015_v5 = vadd.f32 %v2676_v34, %v917_v58  ;;  %v1018_v55 = vadd.f32 %v986_v8, %v920_v11  ;;  %v402_v61 = vmul.f32 %v2181_v16, %v369_v32  ;;  %v857_v34 = vld [vmem:[#allocation2 + $0x181] sm:$0xff]  ;;  %v858_v11 = vld [vmem:[#allocation2 + $0x189] sm:$0xff] }
  0xac   :  { %v530_v52 = vadd.f32 %v498_v45, %v432_v39  ;;  %v694_v15 = vmul.f32 %v2226_v43, %v369_v32  ;;  %v724_v7 = vadd.f32 %v692_v37, %v626_v30  ;;  %v919_v54 = vadd.f32 %v887_v57, %v821_v49  ;;  %v243_v62 = vld [vmem:[#allocation2 + $0x21] sm:$0xff]  ;;  %v956_v8 = vld [vmem:[#allocation2 + $0x18a] sm:$0xff] }
  0xad   :  { %v987_v56 = vmul.f32 %v2236_v50, %v369_v32  ;;  %v1047_v46 = vmax.f32 %v1015_v5, 0.0  ;;  %v1050_v38 = vmax.f32 %v1018_v55, 0.0  ;;  %v2721_v51 = vadd.f32 %v402_v61, %v336_v48  ;;  %v955_v24 = vld [vmem:[#allocation2 + $0x182] sm:$0xff]  ;;  %v340_v45 = vld [vmem:[#allocation2 + $0x1a] sm:$0xff] }
  0xae   :  { %v628_v36 = vadd.f32 %v596_v18, %v530_v52  ;;  %v792_v33 = vmul.f32 %v2210_v29, %v759_v6  ;;  %v823_v58 = vadd.f32 %v791_v0, %v724_v7  ;;  %v1017_v10 = vadd.f32 %v985_v59, %v919_v54  ;;  %v341_v0 = vld [vmem:[#allocation2 + $0x22] sm:$0xff] }
  0xaf   :  { %1079 = vst.msk [vmem:[#allocation2 + $0x129] sm:$0xff] %vm29_vm0, %v1047_v46  ;;  %v890_v57 = vmul.f32 %v2217_v35, %v857_v34  ;;  %v793_v37 = vmul.f32 %v2210_v29, %v760_v17  ;;  %1082 = vst.msk [vmem:[#allocation2 + $0x151] sm:$0xff] %vm29_vm0, %v1050_v38  ;;  %v891_v53 = vmul.f32 %v2217_v35, %v858_v11 }
  0xb0   :  { %v726_v4 = vadd.f32 %v694_v15, %v628_v36  ;;  %v824_v18 = vadd.f32 %v792_v33, %v725_v41  ;;  %v988_v32 = vmul.f32 %v2236_v50, %v955_v24  ;;  %v921_v59 = vadd.f32 %v889_v60, %v823_v58 }
  0xb1   :  { %v1049_v39 = vmax.f32 %v1017_v10, 0.0  ;;  %v989_v30 = vmul.f32 %v2236_v50, %v956_v8  ;;  %v178_v48 = vmul.f32 %v2166_v12, %v145_v40  ;;  %v276_v5 = vmul.f32 %v2169_v13, %v243_v62 }
  0xb2   :  { %v922_v29 = vadd.f32 %v890_v57, %v824_v18  ;;  %v825_v49 = vadd.f32 %v793_v37, %v726_v4  ;;  %v373_v55 = vmul.f32 %v2181_v16, %v340_v45  ;;  %v1019_v61 = vadd.f32 %v987_v56, %v921_v59  ;;  %v1089_v59 = vld [vmem:[#allocation2] sm:$0xff] }
  0xb3   :  { %1081 = vst.msk [vmem:[#allocation2 + $0x141] sm:$0xff] %vm29_vm0, %v1049_v39  ;;  %v210_v41 = vadd.f32 %v178_v48, %v2197_v20  ;;  %v374_v52 = vmul.f32 %v2181_v16, %v341_v0  ;;  %v470_v60 = vmul.f32 %v2204_v27, %v145_v40  ;;  %v568_v12 = vmul.f32 %v2207_v28, %v243_v62  ;;  %v3446_v48 = vld [vmem:[#allocation14_spill] sm:$0xff] }
  0xb4   :  { %v923_v15 = vadd.f32 %v891_v53, %v825_v49  ;;  %v1020_v7 = vadd.f32 %v988_v32, %v922_v29  ;;  %v405_v54 = vadd.f32 %v373_v55, %v2263_v9  ;;  %v1051_v46 = vmax.f32 %v1019_v61, 0.0  ;;  %v3447_v29 = vld [vmem:[#allocation8_spill] sm:$0xff]  ;;  %v3449_v61 = vld [vmem:[#allocation7_spill] sm:$0xff] }
  0xb5   :  { %v308_v38 = vadd.f32 %v276_v5, %v210_v41  ;;  %v502_v13 = vadd.f32 %v470_v60, %v2258_v3  ;;  %v2742_v56 = vmul.f32 %v2226_v43, %v340_v45  ;;  %v666_v40 = vmul.f32 %v2226_v43, %v341_v0 }
  0xb6   :  { %v1052_v36 = vmax.f32 %v1020_v7, 0.0  ;;  %v1021_v33 = vadd.f32 %v989_v30, %v923_v15  ;;  %v503_v16 = vadd.f32 %v2253_v1, %v405_v54  ;;  %1083 = vst.msk [vmem:[#allocation2 + $0x159] sm:$0xff] %vm29_vm0, %v1051_v46  ;;  %v433_v62 = vadd.f32 %v2707_v26, %v2702_v25  ;;  %v436_v25 = vld [vmem:[#allocation2 + $0x18] sm:$0xff] }
  0xb7   :  { %v406_v9 = vadd.f32 %v374_v52, %v308_v38  ;;  %v600_v58 = vadd.f32 %v568_v12, %v502_v13  ;;  %v499_v3 = vmul.f32 %v759_v6, %v2204_v27  ;;  %v500_v1 = vmul.f32 %v760_v17, %v2204_v27  ;;  %v534_v26 = vld [vmem:[#allocation2 + $0x19] sm:$0xff]  ;;  %v1285_v13 = vld [vmem:[#allocation2 + $0x2] sm:$0xff] }
  0xb8   :  { %1084 = vst.msk [vmem:[#allocation2 + $0x169] sm:$0xff] %vm29_vm0, %v1052_v36  ;;  %v1053_v10 = vmax.f32 %v1021_v33, 0.0  ;;  %v601_v57 = vadd.f32 %v2256_v2, %v503_v16  ;;  %v597_v37 = vmul.f32 %v857_v34, %v2207_v28  ;;  %v695_v53 = vmul.f32 %v955_v24, %v2226_v43  ;;  %v3450_v15 = vld [vmem:[#allocation16_spill] sm:$0xff]  ;;  %v3451_v12 = vld [vmem:[#allocation9_spill] sm:$0xff]  ;;  %v3452_v33 = vld [vmem:[#allocation10_spill] sm:$0xff] }
  0xb9   :  { %v504_v45 = vadd.f32 %v2270_v14, %v406_v9  ;;  %v698_v4 = vadd.f32 %v666_v40, %v600_v58  ;;  %v531_v18 = vadd.f32 %v499_v3, %v433_v62  ;;  %v532_v32 = vadd.f32 %v500_v1, %v2721_v51  ;;  %v2025_v58 = vld [vmem:[#allocation2 + $0x31] sm:$0xff]  ;;  %v3453_v3 = vld [vmem:[#allocation18_spill] sm:$0xff] }
  0xba   :  { %1085 = vst.msk [vmem:[#allocation2 + $0x171] sm:$0xff] %vm29_vm0, %v1053_v10  ;;  %v699_v6 = vadd.f32 %v2277_v21, %v601_v57  ;;  %v598_v2 = vmul.f32 %v858_v11, %v2207_v28  ;;  %v696_v17 = vmul.f32 %v956_v8, %v2226_v43  ;;  %v403_v0 = vadd.f32 %v2214_v31, %v2249_v63  ;;  %v3454_v57 = vld [vmem:[#allocation11_spill] sm:$0xff] }
  0xbb   :  { %v602_v14 = vadd.f32 %v2274_v19, %v504_v45  ;;  %v797_v34 = vadd.f32 %v2280_v22, %v698_v4  ;;  %v629_v24 = vadd.f32 %v597_v37, %v531_v18  ;;  %v469_v51 = vmul.f32 %v2204_v27, %v436_v25  ;;  %v2026_v45 = vld [vmem:[#allocation2 + $0x32] sm:$0xff] }
  0xbc   :  { %v798_v21 = vadd.f32 %v2294_v42, %v699_v6  ;;  %v630_v39 = vadd.f32 %v598_v2, %v532_v32  ;;  %v567_v11 = vmul.f32 %v2207_v28, %v534_v26  ;;  %v2777_v30 = vstv %s2744_s2  ;;  %v1187_v42 = vld [vmem:[#allocation2 + $0x1] sm:$0xff]  ;;  %v3445_v28 = vld [vmem:[#allocation15_spill] sm:$0xff] }
  0xbd   :  { %v700_v43 = vadd.f32 %v2301_v47, %v602_v14  ;;  %v895_v8 = vadd.f32 %v2283_v23, %v797_v34  ;;  %v727_v19 = vadd.f32 %v695_v53, %v629_v24  ;;  %v501_v22 = vadd.f32 %v469_v51, %v403_v0  ;;  %v3456_v53 = vld [vmem:[#allocation12_spill] sm:$0xff]  ;;  %v1090_v26 = vld [vmem:[#allocation2 + $0x8] sm:$0xff] }
  0xbe   :  { %v896_v31 = vadd.f32 %v2297_v44, %v798_v21  ;;  %v728_v63 = vadd.f32 %v696_v17, %v630_v39  ;;  %v1122_v27 = vmul.f32 %v2777_v30, %v1089_v59  ;;  %v2791_v5 = vstv %s2752_s29  ;;  %v3448_v44 = vld [vmem:[#allocation17_spill] sm:$0xff]  ;;  %v1188_v6 = vld [vmem:[#allocation2 + $0x9] sm:$0xff] }
  0xbf   :  { %v799_v47 = vadd.f32 %v3445_v28, %v700_v43  ;;  %v993_v23 = vadd.f32 %v3446_v48, %v895_v8  ;;  %v826_v49 = vadd.f32 %v3447_v29, %v727_v19  ;;  %v599_v52 = vadd.f32 %v567_v11, %v501_v22  ;;  %v1387_v34 = vld [vmem:[#allocation2 + $0x48] sm:$0xff]  ;;  %v2830_v11 = vld [vmem:[#allocation2 + $0x60] sm:$0xff]  ;;  %v2858_v29 = vld [vmem:[#allocation2 + $0x52] sm:$0xff] }
  0xc0   :  { %v994_v55 = vadd.f32 %v3448_v44, %v896_v31  ;;  %v827_v41 = vadd.f32 %v3449_v61, %v728_v63  ;;  %v1154_v60 = vadd.f32 %v1122_v27, %v2197_v20  ;;  %v1220_v38 = vmul.f32 %v2791_v5, %v1187_v42  ;;  %v1485_v39 = vld [vmem:[#allocation2 + $0x49] sm:$0xff]  ;;  %v2842_v63 = vld [vmem:[#allocation2 + $0x61] sm:$0xff] }
  0xc1   :  { %v897_v7 = vadd.f32 %v3450_v15, %v799_v47  ;;  %v1025_v54 = vmax.f32 %v993_v23, 0.0  ;;  %v924_v46 = vadd.f32 %v3451_v12, %v826_v49  ;;  %v697_v40 = vadd.f32 %v2742_v56, %v599_v52  ;;  %v3455_v56 = vld [vmem:[#allocation13_spill] sm:$0xff]  ;;  %v1583_v51 = vld [vmem:[#allocation2 + $0x4a] sm:$0xff] }
  0xc2   :  { %v1026_v36 = vmax.f32 %v994_v55, 0.0  ;;  %v925_v16 = vadd.f32 %v3452_v33, %v827_v41  ;;  %v2808_v9 = vstv %s2765_s30  ;;  %v862_v62 = vmul.f32 %v2025_v58, %v2217_v35  ;;  %v2844_v22 = vld [vmem:[#allocation2 + $0x62] sm:$0xff]  ;;  %v2846_v27 = vld [vmem:[#allocation2 + $0x50] sm:$0xff] }
  0xc3   :  { %v995_v10 = vadd.f32 %v3453_v3, %v897_v7  ;;  %1057 = vst.msk [vmem:[#allocation2 + $0x21] sm:$0xff] %vm29_vm0, %v1025_v54  ;;  %v1022_v1 = vadd.f32 %v3454_v57, %v924_v46  ;;  %v1252_v37 = vadd.f32 %v1220_v38, %v1154_v60  ;;  %v960_v4 = vmul.f32 %v2026_v45, %v2236_v50  ;;  %v1286_v50 = vld [vmem:[#allocation2 + $0xa] sm:$0xff] }
  0xc4   :  { %1058 = vst.msk [vmem:[#allocation2 + $0x31] sm:$0xff] %vm29_vm0, %v1026_v36  ;;  %v1023_v18 = vadd.f32 %v3455_v56, %v925_v16  ;;  %v796_v25 = vadd.f32 %v3456_v53, %v697_v40  ;;  %v1318_v35 = vmul.f32 %v2808_v9, %v1285_v13  ;;  %v2820_v17 = vstv %s2779_s8  ;;  %3457 = vst [vmem:[#allocation15_spill] sm:$0xff] %v2844_v22  ;;  %v2856_v23 = vld [vmem:[#allocation2 + $0x51] sm:$0xff]  ;;  %v2871_v41 = vld [vmem:[#allocation2 + $0x68] sm:$0xff] }
  0xc5   :  { %v1027_v32 = vmax.f32 %v995_v10, 0.0  ;;  %v1054_v2 = vmax.f32 %v1022_v1, 0.0  ;;  %v2823_v14 = vstv %s2781_s9  ;;  %v2828_v21 = vstv %s2785_s10  ;;  %v2885_v46 = vld [vmem:[#allocation2 + $0x69] sm:$0xff] }
  0xc6   :  { %v1055_v24 = vmax.f32 %v1023_v18, 0.0  ;;  %v894_v0 = vadd.f32 %v862_v62, %v796_v25  ;;  %v2825_v59 = vadd.f32 %v1318_v35, %v1252_v37  ;;  %v2835_v43 = vstv %s2793_s11  ;;  %v2898_v58 = vld [vmem:[#allocation2 + $0x6a] sm:$0xff] }
  0xc7   :  { %1059 = vst.msk [vmem:[#allocation2 + $0x39] sm:$0xff] %vm29_vm0, %v1027_v32  ;;  %1086 = vst.msk [vmem:[#allocation2 + $0x181] sm:$0xff] %vm29_vm0, %v1054_v2  ;;  %v2838_v8 = vstv %s2795_s12  ;;  %v1123_v19 = vmul.f32 %v2777_v30, %v1090_v26  ;;  %v1221_v31 = vmul.f32 %v2791_v5, %v1188_v6  ;;  %v2850_v28 = vstv %s2800_s13 }
  0xc8   :  { %1087 = vst.msk [vmem:[#allocation2 + $0x189] sm:$0xff] %vm29_vm0, %v1055_v24  ;;  %v992_v42 = vadd.f32 %v960_v4, %v894_v0  ;;  %3458 = vst [vmem:[#allocation14_spill] sm:$0xff] %v2850_v28  ;;  %v1319_v47 = vmul.f32 %v2808_v9, %v1286_v50  ;;  %v2854_v48 = vmul.f32 %v2820_v17, %v1387_v34 }
  0xc9   :  { %v1155_v49 = vadd.f32 %v1123_v19, %v2197_v20  ;;  %v2862_v44 = vmul.f32 %v2823_v14, %v1485_v39  ;;  %v2865_v55 = vmul.f32 %v2828_v21, %v1583_v51  ;;  %v2869_v61 = vmul.f32 %v2835_v43, %v2830_v11 }
  0xca   :  { %v1024_v52 = vmax.f32 %v992_v42, 0.0  ;;  %v1482_v60 = vld [vmem:[#allocation2 + $0x21] sm:$0xff]  ;;  %v2875_v7 = vmul.f32 %v2838_v8, %v2842_v63  ;;  %v2879_v54 = vmul.f32 %v2850_v28, %v2844_v22  ;;  %v2883_v12 = vmul.f32 %v2820_v17, %v2846_v27  ;;  %v2941_v42 = vld [vmem:[#allocation2 + $0x78] sm:$0xff] }
  0xcb   :  { %v1580_v15 = vld [vmem:[#allocation2 + $0x22] sm:$0xff]  ;;  %v1677_v38 = vld [vmem:[#allocation2 + $0x30] sm:$0xff]  ;;  %v1253_v36 = vadd.f32 %v1221_v31, %v1155_v49  ;;  %v2888_v33 = vmul.f32 %v2823_v14, %v1482_v60  ;;  %v2892_v16 = vmul.f32 %v2823_v14, %v2856_v23  ;;  %v2896_v40 = vmul.f32 %v2828_v21, %v2858_v29  ;;  %3461 = vst [vmem:[#allocation7_spill] sm:$0xff] %v2941_v42 }
  0xcc   :  { %v1775_v13 = vld [vmem:[#allocation2 + $0x31] sm:$0xff]  ;;  %1056 = vst.msk [vmem:[#allocation2 + $0x19] sm:$0xff] %vm29_vm0, %v1024_v52  ;;  %v2902_v62 = vmul.f32 %v2835_v43, %v1677_v38  ;;  %v2905_v3 = vmul.f32 %v2828_v21, %v1580_v15  ;;  %v1126_v10 = vmul.f32 %v1677_v38, %v2777_v30  ;;  %v2910_v57 = vmul.f32 %v2835_v43, %v2871_v41  ;;  %v2951_v15 = vld [vmem:[#allocation2 + $0x7a] sm:$0xff] }
  0xcd   :  { %v2913_v1 = vmul.f32 %v2838_v8, %v1775_v13  ;;  %v1351_v37 = vadd.f32 %v1319_v47, %v1253_v36  ;;  %v1224_v45 = vmul.f32 %v1775_v13, %v2791_v5  ;;  %v1128_v4 = vmul.f32 %v1387_v34, %v2777_v30  ;;  %v2943_v47 = vld [vmem:[#allocation2 + $0x79] sm:$0xff]  ;;  %3464 = vst [vmem:[#allocation10_spill] sm:$0xff] %v2951_v15 }
  0xce   :  { %v1873_v56 = vld [vmem:[#allocation2 + $0x32] sm:$0xff]  ;;  %v1158_v25 = vadd.f32 %v1126_v10, %v2197_v20  ;;  %v2920_v35 = vmul.f32 %v2838_v8, %v2885_v46  ;;  %v2924_v26 = vmul.f32 %v2850_v28, %v2898_v58  ;;  %v1226_v6 = vmul.f32 %v1485_v39, %v2791_v5  ;;  %v1874_v50 = vld [vmem:[#allocation2 + $0x3a] sm:$0xff]  ;;  %3462 = vst [vmem:[#allocation16_spill] sm:$0xff] %v2943_v47 }
  0xcf   :  { %v1678_v18 = vld [vmem:[#allocation2 + $0x38] sm:$0xff]  ;;  %v2928_v32 = vmul.f32 %v2850_v28, %v1873_v56  ;;  %v1324_v34 = vmul.f32 %v1583_v51, %v2808_v9  ;;  %v1422_v24 = vmul.f32 %v2830_v11, %v2820_v17  ;;  %v1322_v31 = vmul.f32 %v1873_v56, %v2808_v9 }
  0xd0   :  { %v1776_v53 = vld [vmem:[#allocation2 + $0x39] sm:$0xff]  ;;  %3459 = vst [vmem:[#allocation8_spill] sm:$0xff] %v2920_v35  ;;  %3460 = vst [vmem:[#allocation17_spill] sm:$0xff] %v2924_v26  ;;  %v2931_v2 = vmul.f32 %v2835_v43, %v1678_v18  ;;  %v1256_v19 = vadd.f32 %v1224_v45, %v1158_v25  ;;  %v1127_v39 = vmul.f32 %v1678_v18, %v2777_v30 }
  0xd1   :  { %v2937_v0 = vmul.f32 %v2838_v8, %v1776_v53  ;;  %v2946_v49 = vmul.f32 %v2850_v28, %v1874_v50  ;;  %v1225_v51 = vmul.f32 %v1776_v53, %v2791_v5  ;;  %v1323_v52 = vmul.f32 %v1874_v50, %v2808_v9 }
  0xd2   :  { %v1160_v60 = vadd.f32 %v1128_v4, %v2197_v20  ;;  %v1354_v38 = vadd.f32 %v1322_v31, %v1256_v19  ;;  %v1159_v13 = vadd.f32 %v1127_v39, %v2197_v20  ;;  %v1520_v36 = vmul.f32 %v2842_v63, %v2823_v14 }
  0xd3   :  { %3463 = vst [vmem:[#allocation9_spill] sm:$0xff] %v2946_v49  ;;  %v1618_v10 = vmul.f32 %v2844_v22, %v2828_v21  ;;  %v1383_v45 = vld [vmem:[#allocation2 + $0x18] sm:$0xff]  ;;  %v1716_v53 = vmul.f32 %v2835_v43, %v2941_v42  ;;  %v1814_v4 = vmul.f32 %v2838_v8, %v2943_v47  ;;  %v1129_v25 = vmul.f32 %v2846_v27, %v2777_v30  ;;  %v1384_v19 = vld [vmem:[#allocation2 + $0x20] sm:$0xff] }
  0xd4   :  { %v1481_v56 = vld [vmem:[#allocation2 + $0x19] sm:$0xff]  ;;  %v1258_v18 = vadd.f32 %v1226_v6, %v1160_v60  ;;  %v1416_v50 = vmul.f32 %v2820_v17, %v1383_v45  ;;  %v1452_v31 = vadd.f32 %v2854_v48, %v1354_v38  ;;  %v1912_v39 = vmul.f32 %v2850_v28, %v2951_v15 }
  0xd5   :  { %v1227_v6 = vmul.f32 %v2856_v23, %v2791_v5  ;;  %v1579_v60 = vld [vmem:[#allocation2 + $0x1a] sm:$0xff]  ;;  %v1417_v26 = vmul.f32 %v2820_v17, %v1384_v19  ;;  %v1257_v42 = vadd.f32 %v1225_v51, %v1159_v13  ;;  %v1161_v47 = vadd.f32 %v1129_v25, %v2197_v20 }
  0xd6   :  { %v1356_v35 = vadd.f32 %v1324_v34, %v1258_v18  ;;  %v1448_v27 = vadd.f32 %v1416_v50, %v2825_v59  ;;  %v1514_v45 = vmul.f32 %v2823_v14, %v1481_v56  ;;  %v1550_v49 = vadd.f32 %v2862_v44, %v1452_v31  ;;  %v2983_v18 = vld [vmem:[#allocation2 + $0x80] sm:$0xff] }
  0xd7   :  { %v1325_v48 = vmul.f32 %v2858_v29, %v2808_v9  ;;  %v1449_v38 = vadd.f32 %v1417_v26, %v1351_v37  ;;  %v1355_v15 = vadd.f32 %v1323_v52, %v1257_v42  ;;  %v1259_v23 = vadd.f32 %v1227_v6, %v1161_v47 }
  0xd8   :  { %v1454_v28 = vadd.f32 %v1422_v24, %v1356_v35  ;;  %v1546_v22 = vadd.f32 %v1514_v45, %v1448_v27  ;;  %v1612_v19 = vmul.f32 %v2828_v21, %v1579_v60  ;;  %v1648_v34 = vadd.f32 %v2865_v55, %v1550_v49  ;;  %v3468_v27 = vld [vmem:[#allocation7_spill] sm:$0xff] }
  0xd9   :  { %v1423_v51 = vmul.f32 %v2871_v41, %v2820_v17  ;;  %v1547_v59 = vadd.f32 %v2888_v33, %v1449_v38  ;;  %v1453_v13 = vadd.f32 %v2883_v12, %v1355_v15  ;;  %v1357_v56 = vadd.f32 %v1325_v48, %v1259_v23  ;;  %v3000_v15 = vld [vmem:[#allocation2 + $0x81] sm:$0xff] }
  0xda   :  { %v1552_v44 = vadd.f32 %v1520_v36, %v1454_v28  ;;  %v1644_v29 = vadd.f32 %v1612_v19, %v1546_v22  ;;  %v1746_v37 = vadd.f32 %v2869_v61, %v1648_v34  ;;  %v1521_v35 = vmul.f32 %v2885_v46, %v2823_v14  ;;  %v3469_v48 = vld [vmem:[#allocation17_spill] sm:$0xff]  ;;  %v3470_v23 = vld [vmem:[#allocation14_spill] sm:$0xff] }
  0xdb   :  { %v1619_v55 = vmul.f32 %v2898_v58, %v2828_v21  ;;  %v1645_v26 = vadd.f32 %v2905_v3, %v1547_v59  ;;  %v1551_v24 = vadd.f32 %v2892_v16, %v1453_v13  ;;  %v1455_v42 = vadd.f32 %v1423_v51, %v1357_v56  ;;  %v3471_v51 = vld [vmem:[#allocation16_spill] sm:$0xff]  ;;  %v1685_v13 = vld [vmem:[#allocation2 + $0x90] sm:$0xff] }
  0xdc   :  { %v1650_v33 = vadd.f32 %v1618_v10, %v1552_v44  ;;  %v1742_v28 = vadd.f32 %v2902_v62, %v1644_v29  ;;  %v1844_v12 = vadd.f32 %v2875_v7, %v1746_v37  ;;  %v1717_v22 = vmul.f32 %v2835_v43, %v2983_v18  ;;  %v1783_v29 = vld [vmem:[#allocation2 + $0x91] sm:$0xff] }
  0xdd   :  { %v1130_v61 = vmul.f32 %v2830_v11, %v2777_v30  ;;  %v1743_v47 = vadd.f32 %v2931_v2, %v1645_v26  ;;  %v1649_v49 = vadd.f32 %v2896_v40, %v1551_v24  ;;  %v1553_v3 = vadd.f32 %v1521_v35, %v1455_v42  ;;  %v3472_v35 = vld [vmem:[#allocation10_spill] sm:$0xff]  ;;  %v1881_v26 = vld [vmem:[#allocation2 + $0x92] sm:$0xff] }
  0xde   :  { %v1748_v52 = vadd.f32 %v1716_v53, %v1650_v33  ;;  %v1840_v16 = vadd.f32 %v2913_v1, %v1742_v28  ;;  %v1942_v62 = vadd.f32 %v2879_v54, %v1844_v12  ;;  %v1228_v36 = vmul.f32 %v2842_v63, %v2791_v5  ;;  %v1880_v1 = vld [vmem:[#allocation2 + $0x82] sm:$0xff]  ;;  %v3465_v63 = vld [vmem:[#allocation15_spill] sm:$0xff] }
  0xdf   :  { %v1162_v7 = vadd.f32 %v1130_v61, %v2197_v20  ;;  %v1841_v10 = vadd.f32 %v2937_v0, %v1743_v47  ;;  %v1747_v11 = vadd.f32 %v2910_v57, %v1649_v49  ;;  %v1651_v25 = vadd.f32 %v1619_v55, %v1553_v3  ;;  %v3466_v0 = vld [vmem:[#allocation9_spill] sm:$0xff]  ;;  %v3467_v57 = vld [vmem:[#allocation8_spill] sm:$0xff] }
  0xe0   :  { %v1846_v2 = vadd.f32 %v1814_v4, %v1748_v52  ;;  %v1938_v40 = vadd.f32 %v2928_v32, %v1840_v16  ;;  %1974 = vst.msk [vmem:[%s3423_s3 + $0x20] sm:$0xff] %vm29_vm0, %v1942_v62  ;;  %v1815_v54 = vmul.f32 %v2838_v8, %v3000_v15  ;;  %v1326_v50 = vmul.f32 %v3465_v63, %v2808_v9  ;;  %v1686_v47 = vld [vmem:[#allocation2 + $0x98] sm:$0xff] }
  0xe1   :  { %v1260_v53 = vadd.f32 %v1228_v36, %v1162_v7  ;;  %v1939_v31 = vadd.f32 %v3466_v0, %v1841_v10  ;;  %v1845_v4 = vadd.f32 %v3467_v57, %v1747_v11  ;;  %v1749_v60 = vadd.f32 %v1717_v22, %v1651_v25  ;;  %v1784_v36 = vld [vmem:[#allocation2 + $0x99] sm:$0xff] }
  0xe2   :  { %v1944_v6 = vadd.f32 %v1912_v39, %v1846_v2  ;;  %1970 = vst.msk [vmem:[%s3423_s3] sm:$0xff] %vm29_vm0, %v1938_v40  ;;  %v1424_v45 = vmul.f32 %v3468_v27, %v2820_v17  ;;  %v1913_v19 = vmul.f32 %v3470_v23, %v1880_v1  ;;  %v1522_v59 = vmul.f32 %v3471_v51, %v2823_v14  ;;  %v1882_v10 = vld [vmem:[#allocation2 + $0x9a] sm:$0xff] }
  0xe3   :  { %v1358_v32 = vadd.f32 %v1326_v50, %v1260_v53  ;;  %1971 = vst.msk [vmem:[%s3423_s3 + $0x8] sm:$0xff] %vm29_vm0, %v1939_v31  ;;  %v1943_v38 = vadd.f32 %v3469_v48, %v1845_v4  ;;  %v1847_v39 = vadd.f32 %v1815_v54, %v1749_v60  ;;  %v1131_v44 = vmul.f32 %v2871_v41, %v2777_v30  ;;  %v1687_v4 = vld [vmem:[#allocation2 + $0xa8] sm:$0xff] }
  0xe4   :  { %1976 = vst.msk [vmem:[%s3423_s3 + $0x30] sm:$0xff] %vm29_vm0, %v1944_v6  ;;  %v1620_v55 = vmul.f32 %v3472_v35, %v2828_v21  ;;  %v1229_v33 = vmul.f32 %v2885_v46, %v2791_v5  ;;  %v1718_v41 = vmul.f32 %v2835_v43, %v1685_v13  ;;  %v1132_v42 = vmul.f32 %v3468_v27, %v2777_v30 }
  0xe5   :  { %v1456_v34 = vadd.f32 %v1424_v45, %v1358_v32  ;;  %1975 = vst.msk [vmem:[%s3423_s3 + $0x28] sm:$0xff] %vm29_vm0, %v1943_v38  ;;  %v1945_v56 = vadd.f32 %v1913_v19, %v1847_v39  ;;  %v1163_v24 = vadd.f32 %v1131_v44, %v2197_v20  ;;  %v1816_v12 = vmul.f32 %v2838_v8, %v1783_v29  ;;  %v1785_v32 = vld [vmem:[#allocation2 + $0xa9] sm:$0xff] }
  0xe6   :  { %v1327_v61 = vmul.f32 %v2898_v58, %v2808_v9  ;;  %v1914_v46 = vmul.f32 %v3470_v23, %v1881_v26  ;;  %v1425_v49 = vmul.f32 %v2983_v18, %v2820_v17  ;;  %v1164_v52 = vadd.f32 %v1132_v42, %v2197_v20  ;;  %v1688_v42 = vld [vmem:[#allocation2 + $0xb0] sm:$0xff] }
  0xe7   :  { %v1554_v37 = vadd.f32 %v1522_v59, %v1456_v34  ;;  %1977 = vst.msk [vmem:[%s3423_s3 + $0x38] sm:$0xff] %vm29_vm0, %v1945_v56  ;;  %v1261_v22 = vadd.f32 %v1229_v33, %v1163_v24  ;;  %v1230_v3 = vmul.f32 %v3471_v51, %v2791_v5  ;;  %v1523_v7 = vmul.f32 %v3000_v15, %v2823_v14 }
  0xe8   :  { %v1133_v58 = vmul.f32 %v2983_v18, %v2777_v30  ;;  %v1621_v11 = vmul.f32 %v1880_v1, %v2828_v21  ;;  %v1719_v2 = vmul.f32 %v2835_v43, %v1686_v47  ;;  %v1328_v40 = vmul.f32 %v3472_v35, %v2808_v9 }
  0xe9   :  { %v1652_v28 = vadd.f32 %v1620_v55, %v1554_v37  ;;  %v1359_v62 = vadd.f32 %v1327_v61, %v1261_v22  ;;  %v1262_v25 = vadd.f32 %v1230_v3, %v1164_v52  ;;  %v1231_v50 = vmul.f32 %v3000_v15, %v2791_v5  ;;  %v3082_v15 = vld [vmem:[#allocation2 + $0xaa] sm:$0xff] }
  0xea   :  { %v1165_v63 = vadd.f32 %v1133_v58, %v2197_v20  ;;  %v1817_v0 = vmul.f32 %v2838_v8, %v1784_v36  ;;  %v1915_v31 = vmul.f32 %v3470_v23, %v1882_v10  ;;  %v1426_v57 = vmul.f32 %v1685_v13, %v2820_v17  ;;  %v1786_v3 = vld [vmem:[#allocation2 + $0xb1] sm:$0xff] }
  0xeb   :  { %v1750_v16 = vadd.f32 %v1718_v41, %v1652_v28  ;;  %v1457_v53 = vadd.f32 %v1425_v49, %v1359_v62  ;;  %v1360_v18 = vadd.f32 %v1328_v40, %v1262_v25  ;;  %v1329_v45 = vmul.f32 %v1880_v1, %v2808_v9  ;;  %v1884_v25 = vld [vmem:[#allocation2 + $0xb2] sm:$0xff] }
  0xec   :  { %v1263_v27 = vadd.f32 %v1231_v50, %v1165_v63  ;;  %v1524_v38 = vmul.f32 %v1783_v29, %v2823_v14  ;;  %v1622_v39 = vmul.f32 %v1881_v26, %v2828_v21  ;;  %v1134_v19 = vmul.f32 %v1685_v13, %v2777_v30 }
  0xed   :  { %v1848_v54 = vadd.f32 %v1816_v12, %v1750_v16  ;;  %v1555_v60 = vadd.f32 %v1523_v7, %v1457_v53  ;;  %v1458_v48 = vadd.f32 %v1426_v57, %v1360_v18  ;;  %v1720_v51 = vmul.f32 %v2835_v43, %v1687_v4 }
  0xee   :  { %v1361_v59 = vadd.f32 %v1329_v45, %v1263_v27  ;;  %v1427_v1 = vmul.f32 %v1686_v47, %v2820_v17  ;;  %v1818_v56 = vmul.f32 %v2838_v8, %v1785_v32  ;;  %v1166_v37 = vadd.f32 %v1134_v19, %v2197_v20  ;;  %v1885_v19 = vld [vmem:[#allocation2 + $0xc2] sm:$0xff] }
  0xef   :  { %v1946_v6 = vadd.f32 %v1914_v46, %v1848_v54  ;;  %v1653_v34 = vadd.f32 %v1621_v11, %v1555_v60  ;;  %v1556_v44 = vadd.f32 %v1524_v38, %v1458_v48  ;;  %v1232_v35 = vmul.f32 %v1783_v29, %v2791_v5 }
  0xf0   :  { %v1916_v13 = vmul.f32 %v3470_v23, %v3082_v15  ;;  %v1459_v24 = vadd.f32 %v1427_v1, %v1361_v59  ;;  %v1525_v33 = vmul.f32 %v1784_v36, %v2823_v14  ;;  %v1330_v12 = vmul.f32 %v1881_v26, %v2808_v9  ;;  %v1690_v59 = vld [vmem:[#allocation2 + $0xc8] sm:$0xff] }
  0xf1   :  { %1978 = vst.msk [vmem:[%s3423_s3 + $0x40] sm:$0xff] %vm29_vm0, %v1946_v6  ;;  %v1751_v55 = vadd.f32 %v1719_v2, %v1653_v34  ;;  %v1654_v41 = vadd.f32 %v1622_v39, %v1556_v44  ;;  %v1264_v28 = vadd.f32 %v1232_v35, %v1166_v37  ;;  %v1135_v22 = vmul.f32 %v1686_v47, %v2777_v30  ;;  %v1787_v6 = vld [vmem:[#allocation2 + $0xc1] sm:$0xff] }
  0xf2   :  { %v1557_v46 = vadd.f32 %v1525_v33, %v1459_v24  ;;  %v1623_v49 = vmul.f32 %v1882_v10, %v2828_v21  ;;  %v1428_v29 = vmul.f32 %v1687_v4, %v2820_v17  ;;  %v1233_v7 = vmul.f32 %v1784_v36, %v2791_v5 }
  0xf3   :  { %v1849_v61 = vadd.f32 %v1817_v0, %v1751_v55  ;;  %v1752_v52 = vadd.f32 %v1720_v51, %v1654_v41  ;;  %v1362_v16 = vadd.f32 %v1330_v12, %v1264_v28  ;;  %v1167_v62 = vadd.f32 %v1135_v22, %v2197_v20  ;;  %v1689_v0 = vld [vmem:[#allocation2 + $0xc0] sm:$0xff] }
  0xf4   :  { %v1655_v11 = vadd.f32 %v1623_v49, %v1557_v46  ;;  %v1721_v2 = vmul.f32 %v2835_v43, %v1688_v42  ;;  %v1526_v26 = vmul.f32 %v1785_v32, %v2823_v14  ;;  %v1331_v53 = vmul.f32 %v1882_v10, %v2808_v9 }
  0xf5   :  { %v1947_v58 = vadd.f32 %v1915_v31, %v1849_v61  ;;  %v1850_v47 = vadd.f32 %v1818_v56, %v1752_v52  ;;  %v1460_v40 = vadd.f32 %v1428_v29, %v1362_v16  ;;  %v1265_v54 = vadd.f32 %v1233_v7, %v1167_v62  ;;  %v1886_v61 = vld [vmem:[#allocation2 + $0xca] sm:$0xff] }
  0xf6   :  { %v1753_v63 = vadd.f32 %v1721_v2, %v1655_v11  ;;  %v1819_v36 = vmul.f32 %v2838_v8, %v1786_v3  ;;  %v1624_v50 = vmul.f32 %v3082_v15, %v2828_v21  ;;  %v1136_v31 = vmul.f32 %v1687_v4, %v2777_v30  ;;  %v1789_v11 = vld [vmem:[#allocation2 + $0xd9] sm:$0xff] }
  0xf7   :  { %1979 = vst.msk [vmem:[%s3423_s3 + $0x48] sm:$0xff] %vm29_vm0, %v1947_v58  ;;  %v1948_v18 = vadd.f32 %v1916_v13, %v1850_v47  ;;  %v1558_v57 = vadd.f32 %v1526_v26, %v1460_v40  ;;  %v1363_v60 = vadd.f32 %v1331_v53, %v1265_v54  ;;  %v1429_v10 = vmul.f32 %v1688_v42, %v2820_v17  ;;  %v1788_v13 = vld [vmem:[#allocation2 + $0xc9] sm:$0xff]  ;;  %v1691_v58 = vld [vmem:[#allocation2 + $0xd8] sm:$0xff] }
  0xf8   :  { %v1851_v27 = vadd.f32 %v1819_v36, %v1753_v63  ;;  %v1917_v45 = vmul.f32 %v3470_v23, %v1884_v25  ;;  %v1168_v48 = vadd.f32 %v1136_v31, %v2197_v20  ;;  %v1234_v38 = vmul.f32 %v1785_v32, %v2791_v5  ;;  %v1887_v53 = vld [vmem:[#allocation2 + $0xda] sm:$0xff] }
  0xf9   :  { %1980 = vst.msk [vmem:[%s3423_s3 + $0x50] sm:$0xff] %vm29_vm0, %v1948_v18  ;;  %v1656_v39 = vadd.f32 %v1624_v50, %v1558_v57  ;;  %v1722_v4 = vmul.f32 %v2835_v43, %v1689_v0  ;;  %v1461_v34 = vadd.f32 %v1429_v10, %v1363_v60  ;;  %v1527_v51 = vmul.f32 %v1786_v3, %v2823_v14  ;;  %v1692_v60 = vld [vmem:[#allocation2 + $0xe0] sm:$0xff] }
  0xfa   :  { %v1949_v1 = vadd.f32 %v1917_v45, %v1851_v27  ;;  %v1820_v44 = vmul.f32 %v2838_v8, %v1787_v6  ;;  %v1266_v56 = vadd.f32 %v1234_v38, %v1168_v48  ;;  %v1332_v32 = vmul.f32 %v3082_v15, %v2808_v9  ;;  %v1790_v45 = vld [vmem:[#allocation2 + $0xe1] sm:$0xff] }
  0xfb   :  { %v1754_v37 = vadd.f32 %v1722_v4, %v1656_v39  ;;  %v1559_v35 = vadd.f32 %v1527_v51, %v1461_v34  ;;  %v1625_v55 = vmul.f32 %v1884_v25, %v2828_v21  ;;  %v1137_v24 = vmul.f32 %v1688_v42, %v2777_v30 }
  0xfc   :  { %1981 = vst.msk [vmem:[%s3423_s3 + $0x58] sm:$0xff] %vm29_vm0, %v1949_v1  ;;  %v1918_v33 = vmul.f32 %v3470_v23, %v1885_v19  ;;  %v1723_v41 = vmul.f32 %v2835_v43, %v1690_v59  ;;  %v1364_v28 = vadd.f32 %v1332_v32, %v1266_v56  ;;  %v1430_v12 = vmul.f32 %v1689_v0, %v2820_v17 }
  0xfd   :  { %v1852_v15 = vadd.f32 %v1820_v44, %v1754_v37  ;;  %v1657_v22 = vadd.f32 %v1625_v55, %v1559_v35  ;;  %v1169_v46 = vadd.f32 %v1137_v24, %v2197_v20  ;;  %v1235_v49 = vmul.f32 %v1786_v3, %v2791_v5  ;;  %v1693_v35 = vld [vmem:[#allocation2 + $0xf0] sm:$0xff] }
  0xfe   :  { %v1821_v42 = vmul.f32 %v2838_v8, %v1788_v13  ;;  %v1462_v29 = vadd.f32 %v1430_v12, %v1364_v28  ;;  %v1528_v52 = vmul.f32 %v1787_v6, %v2823_v14  ;;  %v1333_v16 = vmul.f32 %v1884_v25, %v2808_v9 }
  0xff   :  { %v1950_v62 = vadd.f32 %v1918_v33, %v1852_v15  ;;  %v1755_v7 = vadd.f32 %v1723_v41, %v1657_v22  ;;  %v1267_v2 = vadd.f32 %v1235_v49, %v1169_v46  ;;  %v1138_v26 = vmul.f32 %v1689_v0, %v2777_v30  ;;  %v1791_v15 = vld [vmem:[#allocation2 + $0xf1] sm:$0xff] }
 0x100   :  { %v1919_v47 = vmul.f32 %v3470_v23, %v1886_v61  ;;  %v1560_v40 = vadd.f32 %v1528_v52, %v1462_v29  ;;  %v1626_v54 = vmul.f32 %v1885_v19, %v2828_v21  ;;  %v1431_v3 = vmul.f32 %v1690_v59, %v2820_v17 }
 0x101   :  { %1982 = vst.msk [vmem:[%s3423_s3 + $0x60] sm:$0xff] %vm29_vm0, %v1950_v62  ;;  %v1853_v25 = vadd.f32 %v1821_v42, %v1755_v7  ;;  %v1365_v63 = vadd.f32 %v1333_v16, %v1267_v2  ;;  %v1170_v36 = vadd.f32 %v1138_v26, %v2197_v20  ;;  %v1236_v50 = vmul.f32 %v1787_v6, %v2791_v5  ;;  %v1888_v6 = vld [vmem:[#allocation2 + $0xe2] sm:$0xff] }
 0x102   :  { %v1658_v0 = vadd.f32 %v1626_v54, %v1560_v40  ;;  %v1724_v31 = vmul.f32 %v2835_v43, %v1691_v58  ;;  %v1822_v18 = vmul.f32 %v2838_v8, %v1789_v11  ;;  %v1529_v57 = vmul.f32 %v1788_v13, %v2823_v14  ;;  %v1889_v40 = vld [vmem:[#allocation2 + $0xf2] sm:$0xff] }
 0x103   :  { %v1951_v10 = vadd.f32 %v1919_v47, %v1853_v25  ;;  %v1463_v27 = vadd.f32 %v1431_v3, %v1365_v63  ;;  %v1268_v48 = vadd.f32 %v1236_v50, %v1170_v36  ;;  %v1334_v38 = vmul.f32 %v1885_v19, %v2808_v9  ;;  %v1694_v3 = vld [vmem:[#allocation2 + $0xf8] sm:$0xff] }
 0x104   :  { %v1756_v39 = vadd.f32 %v1724_v31, %v1658_v0  ;;  %v1920_v4 = vmul.f32 %v3470_v23, %v1887_v53  ;;  %v1627_v34 = vmul.f32 %v1886_v61, %v2828_v21  ;;  %v1139_v51 = vmul.f32 %v1690_v59, %v2777_v30 }
 0x105   :  { %1983 = vst.msk [vmem:[%s3423_s3 + $0x68] sm:$0xff] %vm29_vm0, %v1951_v10  ;;  %v1561_v1 = vadd.f32 %v1529_v57, %v1463_v27  ;;  %v1725_v44 = vmul.f32 %v2835_v43, %v1692_v60  ;;  %v1366_v56 = vadd.f32 %v1334_v38, %v1268_v48  ;;  %v1432_v32 = vmul.f32 %v1691_v58, %v2820_v17  ;;  %v1792_v57 = vld [vmem:[#allocation2 + $0xf9] sm:$0xff] }
 0x106   :  { %v1854_v19 = vadd.f32 %v1822_v18, %v1756_v39  ;;  %v1823_v37 = vmul.f32 %v2838_v8, %v1790_v45  ;;  %v1171_v55 = vadd.f32 %v1139_v51, %v2197_v20  ;;  %v1237_v24 = vmul.f32 %v1788_v13, %v2791_v5 }
 0x107   :  { %v1659_v59 = vadd.f32 %v1627_v34, %v1561_v1  ;;  %v1921_v33 = vmul.f32 %v3470_v23, %v1888_v6  ;;  %v1464_v41 = vadd.f32 %v1432_v32, %v1366_v56  ;;  %v1530_v28 = vmul.f32 %v1789_v11, %v2823_v14  ;;  %v1890_v34 = vld [vmem:[#allocation2 + $0xfa] sm:$0xff]  ;;  %v1695_v1 = vld [vmem:[#allocation2 + $0x108] sm:$0xff] }
 0x108   :  { %v1952_v12 = vadd.f32 %v1920_v4, %v1854_v19  ;;  %v1269_v22 = vadd.f32 %v1237_v24, %v1171_v55  ;;  %v1335_v46 = vmul.f32 %v1886_v61, %v2808_v9  ;;  %v1140_v49 = vmul.f32 %v1691_v58, %v2777_v30 }
 0x109   :  { %v1757_v42 = vadd.f32 %v1725_v44, %v1659_v59  ;;  %v1562_v29 = vadd.f32 %v1530_v28, %v1464_v41  ;;  %v1628_v52 = vmul.f32 %v1887_v53, %v2828_v21  ;;  %v1726_v16 = vmul.f32 %v2835_v43, %v1693_v35  ;;  %v1793_v59 = vld [vmem:[#allocation2 + $0x109] sm:$0xff] }
 0x10a   :  { %1984 = vst.msk [vmem:[%s3423_s3 + $0x70] sm:$0xff] %vm29_vm0, %v1952_v12  ;;  %v1367_v13 = vadd.f32 %v1335_v46, %v1269_v22  ;;  %v1433_v62 = vmul.f32 %v1692_v60, %v2820_v17  ;;  %v1172_v7 = vadd.f32 %v1140_v49, %v2197_v20  ;;  %v1238_v61 = vmul.f32 %v1789_v11, %v2791_v5 }
 0x10b   :  { %v1855_v2 = vadd.f32 %v1823_v37, %v1757_v42  ;;  %v1660_v58 = vadd.f32 %v1628_v52, %v1562_v29  ;;  %v1824_v26 = vmul.f32 %v2838_v8, %v1791_v15  ;;  %v1531_v47 = vmul.f32 %v1790_v45, %v2823_v14  ;;  %v1891_v52 = vld [vmem:[#allocation2 + $0x10a] sm:$0xff] }
 0x10c   :  { %v1465_v54 = vadd.f32 %v1433_v62, %v1367_v13  ;;  %v1270_v25 = vadd.f32 %v1238_v61, %v1172_v7  ;;  %v1336_v63 = vmul.f32 %v1887_v53, %v2808_v9  ;;  %v1141_v36 = vmul.f32 %v1692_v60, %v2777_v30 }
 0x10d   :  { %v1953_v50 = vadd.f32 %v1921_v33, %v1855_v2  ;;  %v1758_v0 = vadd.f32 %v1726_v16, %v1660_v58  ;;  %v1629_v31 = vmul.f32 %v1888_v6, %v2828_v21  ;;  %v1434_v11 = vmul.f32 %v1693_v35, %v2820_v17  ;;  %v1696_v16 = vld [vmem:[#allocation2 + $0x110] sm:$0xff] }
 0x10e   :  { %v1563_v18 = vadd.f32 %v1531_v47, %v1465_v54  ;;  %v1368_v10 = vadd.f32 %v1336_v63, %v1270_v25  ;;  %v1173_v27 = vadd.f32 %v1141_v36, %v2197_v20  ;;  %v1239_v48 = vmul.f32 %v1790_v45, %v2791_v5 }
 0x10f   :  { %1985 = vst.msk [vmem:[%s3423_s3 + $0x78] sm:$0xff] %vm29_vm0, %v1953_v50  ;;  %v1856_v53 = vadd.f32 %v1824_v26, %v1758_v0  ;;  %v1922_v60 = vmul.f32 %v3470_v23, %v1889_v40  ;;  %v1727_v38 = vmul.f32 %v2835_v43, %v1694_v3  ;;  %v1532_v39 = vmul.f32 %v1791_v15, %v2823_v14  ;;  %v1892_v0 = vld [vmem:[#allocation2 + $0x112] sm:$0xff] }
 0x110   :  { %v1661_v4 = vadd.f32 %v1629_v31, %v1563_v18  ;;  %v1466_v51 = vadd.f32 %v1434_v11, %v1368_v10  ;;  %v1271_v44 = vadd.f32 %v1239_v48, %v1173_v27  ;;  %v1337_v56 = vmul.f32 %v1888_v6, %v2808_v9 }
 0x111   :  { %v1954_v45 = vadd.f32 %v1922_v60, %v1856_v53  ;;  %v1825_v32 = vmul.f32 %v2838_v8, %v1792_v57  ;;  %v1630_v19 = vmul.f32 %v1889_v40, %v2828_v21  ;;  %v1142_v37 = vmul.f32 %v1693_v35, %v2777_v30  ;;  %v1697_v53 = vld [vmem:[#allocation2 + $0x120] sm:$0xff] }
 0x112   :  { %v1759_v55 = vadd.f32 %v1727_v38, %v1661_v4  ;;  %v1564_v24 = vadd.f32 %v1532_v39, %v1466_v51  ;;  %v1369_v33 = vadd.f32 %v1337_v56, %v1271_v44  ;;  %v1435_v41 = vmul.f32 %v1694_v3, %v2820_v17  ;;  %v1795_v4 = vld [vmem:[#allocation2 + $0x121] sm:$0xff] }
 0x113   :  { %1986 = vst.msk [vmem:[%s3423_s3 + $0x80] sm:$0xff] %vm29_vm0, %v1954_v45  ;;  %v1923_v6 = vmul.f32 %v3470_v23, %v1890_v34  ;;  %v1728_v28 = vmul.f32 %v2835_v43, %v1695_v1  ;;  %v1174_v12 = vadd.f32 %v1142_v37, %v2197_v20  ;;  %v1240_v22 = vmul.f32 %v1791_v15, %v2791_v5  ;;  %v1794_v15 = vld [vmem:[#allocation2 + $0x111] sm:$0xff]  ;;  %v1893_v37 = vld [vmem:[#allocation2 + $0x122] sm:$0xff] }
 0x114   :  { %v1857_v35 = vadd.f32 %v1825_v32, %v1759_v55  ;;  %v1662_v46 = vadd.f32 %v1630_v19, %v1564_v24  ;;  %v1467_v49 = vadd.f32 %v1435_v41, %v1369_v33  ;;  %v1533_v42 = vmul.f32 %v1792_v57, %v2823_v14  ;;  %v1698_v33 = vld [vmem:[#allocation2 + $0x128] sm:$0xff] }
 0x115   :  { %v1826_v29 = vmul.f32 %v2838_v8, %v1793_v59  ;;  %v1272_v13 = vadd.f32 %v1240_v22, %v1174_v12  ;;  %v1338_v62 = vmul.f32 %v1889_v40, %v2808_v9  ;;  %v1143_v7 = vmul.f32 %v1694_v3, %v2777_v30 }
 0x116   :  { %v1955_v61 = vadd.f32 %v1923_v6, %v1857_v35  ;;  %v1760_v2 = vadd.f32 %v1728_v28, %v1662_v46  ;;  %v1565_v58 = vadd.f32 %v1533_v42, %v1467_v49  ;;  %v1631_v26 = vmul.f32 %v1890_v34, %v2828_v21  ;;  %v1796_v49 = vld [vmem:[#allocation2 + $0x129] sm:$0xff] }
 0x117   :  { %v1370_v47 = vadd.f32 %v1338_v62, %v1272_v13  ;;  %v1436_v54 = vmul.f32 %v1695_v1, %v2820_v17  ;;  %v1175_v25 = vadd.f32 %v1143_v7, %v2197_v20  ;;  %v1241_v63 = vmul.f32 %v1792_v57, %v2791_v5 }
 0x118   :  { %1987 = vst.msk [vmem:[%s3423_s3 + $0x88] sm:$0xff] %vm29_vm0, %v1955_v61  ;;  %v1858_v40 = vadd.f32 %v1826_v29, %v1760_v2  ;;  %v1924_v3 = vmul.f32 %v3470_v23, %v1891_v52  ;;  %v1663_v36 = vadd.f32 %v1631_v26, %v1565_v58  ;;  %v1729_v50 = vmul.f32 %v2835_v43, %v1696_v16  ;;  %v1894_v61 = vld [vmem:[#allocation2 + $0x12a] sm:$0xff] }
 0x119   :  { %v1468_v31 = vadd.f32 %v1436_v54, %v1370_v47  ;;  %v1534_v11 = vmul.f32 %v1793_v59, %v2823_v14  ;;  %v1273_v18 = vadd.f32 %v1241_v63, %v1175_v25  ;;  %v1339_v10 = vmul.f32 %v1890_v34, %v2808_v9 }
 0x11a   :  { %v1956_v27 = vadd.f32 %v1924_v3, %v1858_v40  ;;  %v1761_v57 = vadd.f32 %v1729_v50, %v1663_v36  ;;  %v1827_v48 = vmul.f32 %v2838_v8, %v1794_v15  ;;  %v1144_v60 = vmul.f32 %v1695_v1, %v2777_v30  ;;  %v1699_v40 = vld [vmem:[#allocation2 + $0x138] sm:$0xff] }
 0x11b   :  { %v1566_v38 = vadd.f32 %v1534_v11, %v1468_v31  ;;  %v1632_v39 = vmul.f32 %v1891_v52, %v2828_v21  ;;  %v1371_v51 = vadd.f32 %v1339_v10, %v1273_v18  ;;  %v1437_v44 = vmul.f32 %v1696_v16, %v2820_v17  ;;  %v1797_v3 = vld [vmem:[#allocation2 + $0x139] sm:$0xff] }
 0x11c   :  { %1988 = vst.msk [vmem:[%s3423_s3 + $0x90] sm:$0xff] %vm29_vm0, %v1956_v27  ;;  %v1859_v34 = vadd.f32 %v1827_v48, %v1761_v57  ;;  %v1925_v56 = vmul.f32 %v3470_v23, %v1892_v0  ;;  %v1176_v45 = vadd.f32 %v1144_v60, %v2197_v20  ;;  %v1242_v32 = vmul.f32 %v1793_v59, %v2791_v5  ;;  %v1895_v10 = vld [vmem:[#allocation2 + $0x13a] sm:$0xff] }
 0x11d   :  { %v1664_v1 = vadd.f32 %v1632_v39, %v1566_v38  ;;  %v1730_v19 = vmul.f32 %v2835_v43, %v1697_v53  ;;  %v1469_v55 = vadd.f32 %v1437_v44, %v1371_v51  ;;  %v1535_v24 = vmul.f32 %v1794_v15, %v2823_v14  ;;  %v1700_v51 = vld [vmem:[#allocation2 + $0x140] sm:$0xff] }
 0x11e   :  { %v1957_v41 = vadd.f32 %v1925_v56, %v1859_v34  ;;  %v1828_v6 = vmul.f32 %v2838_v8, %v1795_v4  ;;  %v1274_v28 = vadd.f32 %v1242_v32, %v1176_v45  ;;  %v1340_v12 = vmul.f32 %v1891_v52, %v2808_v9  ;;  %v1798_v56 = vld [vmem:[#allocation2 + $0x141] sm:$0xff] }
 0x11f   :  { %v1762_v22 = vadd.f32 %v1730_v19, %v1664_v1  ;;  %v1567_v35 = vadd.f32 %v1535_v24, %v1469_v55  ;;  %v1633_v46 = vmul.f32 %v1892_v0, %v2828_v21  ;;  %v1145_v59 = vmul.f32 %v1696_v16, %v2777_v30 }
 0x120   :  { %1989 = vst.msk [vmem:[%s3423_s3 + $0x98] sm:$0xff] %vm29_vm0, %v1957_v41  ;;  %v1926_v42 = vmul.f32 %v3470_v23, %v1893_v37  ;;  %v1731_v29 = vmul.f32 %v2835_v43, %v1698_v33  ;;  %v1372_v13 = vadd.f32 %v1340_v12, %v1274_v28  ;;  %v1438_v62 = vmul.f32 %v1697_v53, %v2820_v17 }
 0x121   :  { %v1860_v52 = vadd.f32 %v1828_v6, %v1762_v22  ;;  %v1665_v7 = vadd.f32 %v1633_v46, %v1567_v35  ;;  %v1177_v2 = vadd.f32 %v1145_v59, %v2197_v20  ;;  %v1243_v58 = vmul.f32 %v1794_v15, %v2791_v5  ;;  %v1701_v35 = vld [vmem:[#allocation2 + $0x150] sm:$0xff] }
 0x122   :  { %v1829_v16 = vmul.f32 %v2838_v8, %v1796_v49  ;;  %v1470_v26 = vadd.f32 %v1438_v62, %v1372_v13  ;;  %v1536_v47 = vmul.f32 %v1795_v4, %v2823_v14  ;;  %v1341_v54 = vmul.f32 %v1892_v0, %v2808_v9 }
 0x123   :  { %v1958_v25 = vadd.f32 %v1926_v42, %v1860_v52  ;;  %v1763_v63 = vadd.f32 %v1731_v29, %v1665_v7  ;;  %v1275_v36 = vadd.f32 %v1243_v58, %v1177_v2  ;;  %v1146_v50 = vmul.f32 %v1697_v53, %v2777_v30  ;;  %v1799_v52 = vld [vmem:[#allocation2 + $0x151] sm:$0xff] }
 0x124   :  { %v1927_v31 = vmul.f32 %v3470_v23, %v1894_v61  ;;  %v1568_v11 = vadd.f32 %v1536_v47, %v1470_v26  ;;  %v1634_v18 = vmul.f32 %v1893_v37, %v2828_v21  ;;  %v1439_v15 = vmul.f32 %v1698_v33, %v2820_v17 }
 0x125   :  { %1990 = vst.msk [vmem:[%s3423_s3 + $0xa0] sm:$0xff] %vm29_vm0, %v1958_v25  ;;  %v1861_v0 = vadd.f32 %v1829_v16, %v1763_v63  ;;  %v1373_v27 = vadd.f32 %v1341_v54, %v1275_v36  ;;  %v1178_v57 = vadd.f32 %v1146_v50, %v2197_v20  ;;  %v1244_v48 = vmul.f32 %v1795_v4, %v2791_v5  ;;  %v1896_v4 = vld [vmem:[#allocation2 + $0x142] sm:$0xff] }
 0x126   :  { %v1666_v53 = vadd.f32 %v1634_v18, %v1568_v11  ;;  %v1732_v60 = vmul.f32 %v2835_v43, %v1699_v40  ;;  %v1830_v38 = vmul.f32 %v2838_v8, %v1797_v3  ;;  %v1537_v39 = vmul.f32 %v1796_v49, %v2823_v14  ;;  %v1897_v11 = vld [vmem:[#allocation2 + $0x152] sm:$0xff] }
 0x127   :  { %v1959_v44 = vadd.f32 %v1927_v31, %v1861_v0  ;;  %v1471_v34 = vadd.f32 %v1439_v15, %v1373_v27  ;;  %v1276_v45 = vadd.f32 %v1244_v48, %v1178_v57  ;;  %v1342_v32 = vmul.f32 %v1893_v37, %v2808_v9  ;;  %v1702_v15 = vld [vmem:[#allocation2 + $0x158] sm:$0xff] }
 0x128   :  { %v1764_v1 = vadd.f32 %v1732_v60, %v1666_v53  ;;  %v1928_v19 = vmul.f32 %v3470_v23, %v1895_v10  ;;  %v1635_v55 = vmul.f32 %v1894_v61, %v2828_v21  ;;  %v1147_v24 = vmul.f32 %v1698_v33, %v2777_v30 }
 0x129   :  { %1991 = vst.msk [vmem:[%s3423_s3 + $0xa8] sm:$0xff] %vm29_vm0, %v1959_v44  ;;  %v1569_v41 = vadd.f32 %v1537_v39, %v1471_v34  ;;  %v1733_v6 = vmul.f32 %v2835_v43, %v1700_v51  ;;  %v1374_v28 = vadd.f32 %v1342_v32, %v1276_v45  ;;  %v1440_v12 = vmul.f32 %v1699_v40, %v2820_v17  ;;  %v1800_v39 = vld [vmem:[#allocation2 + $0x159] sm:$0xff] }
 0x12a   :  { %v1862_v37 = vadd.f32 %v1830_v38, %v1764_v1  ;;  %v1831_v22 = vmul.f32 %v2838_v8, %v1798_v56  ;;  %v1179_v46 = vadd.f32 %v1147_v24, %v2197_v20  ;;  %v1245_v59 = vmul.f32 %v1796_v49, %v2791_v5 }
 0x12b   :  { %v1667_v33 = vadd.f32 %v1635_v55, %v1569_v41  ;;  %v1929_v42 = vmul.f32 %v3470_v23, %v1896_v4  ;;  %v1472_v29 = vadd.f32 %v1440_v12, %v1374_v28  ;;  %v1538_v13 = vmul.f32 %v1797_v3, %v2823_v14  ;;  %v1898_v55 = vld [vmem:[#allocation2 + $0x15a] sm:$0xff]  ;;  %v1703_v41 = vld [vmem:[#allocation2 + $0x168] sm:$0xff] }
 0x12c   :  { %v1960_v62 = vadd.f32 %v1928_v19, %v1862_v37  ;;  %v1277_v7 = vadd.f32 %v1245_v59, %v1179_v46  ;;  %v1343_v2 = vmul.f32 %v1894_v61, %v2808_v9  ;;  %v1148_v58 = vmul.f32 %v1699_v40, %v2777_v30 }
 0x12d   :  { %v1765_v16 = vadd.f32 %v1733_v6, %v1667_v33  ;;  %v1570_v26 = vadd.f32 %v1538_v13, %v1472_v29  ;;  %v1636_v47 = vmul.f32 %v1895_v10, %v2828_v21  ;;  %v1734_v54 = vmul.f32 %v2835_v43, %v1701_v35  ;;  %v1801_v33 = vld [vmem:[#allocation2 + $0x169] sm:$0xff] }
 0x12e   :  { %1992 = vst.msk [vmem:[%s3423_s3 + $0xb0] sm:$0xff] %vm29_vm0, %v1960_v62  ;;  %v1375_v49 = vadd.f32 %v1343_v2, %v1277_v7  ;;  %v1441_v25 = vmul.f32 %v1700_v51, %v2820_v17  ;;  %v1180_v63 = vadd.f32 %v1148_v58, %v2197_v20  ;;  %v1246_v61 = vmul.f32 %v1797_v3, %v2791_v5 }
 0x12f   :  { %v1863_v36 = vadd.f32 %v1831_v22, %v1765_v16  ;;  %v1668_v40 = vadd.f32 %v1636_v47, %v1570_v26  ;;  %v1832_v50 = vmul.f32 %v2838_v8, %v1799_v52  ;;  %v1539_v31 = vmul.f32 %v1798_v56, %v2823_v14  ;;  %v1899_v47 = vld [vmem:[#allocation2 + $0x16a] sm:$0xff] }
 0x130   :  { %v1473_v18 = vadd.f32 %v1441_v25, %v1375_v49  ;;  %v1278_v0 = vadd.f32 %v1246_v61, %v1180_v63  ;;  %v1344_v27 = vmul.f32 %v1895_v10, %v2808_v9  ;;  %v1149_v57 = vmul.f32 %v1700_v51, %v2777_v30 }
 0x131   :  { %v1961_v48 = vadd.f32 %v1929_v42, %v1863_v36  ;;  %v1766_v53 = vadd.f32 %v1734_v54, %v1668_v40  ;;  %v1637_v60 = vmul.f32 %v1896_v4, %v2828_v21  ;;  %v1442_v3 = vmul.f32 %v1701_v35, %v2820_v17  ;;  %v1704_v54 = vld [vmem:[#allocation2 + $0x170] sm:$0xff] }
 0x132   :  { %v1571_v38 = vadd.f32 %v1539_v31, %v1473_v18  ;;  %v1376_v44 = vadd.f32 %v1344_v27, %v1278_v0  ;;  %v1181_v34 = vadd.f32 %v1149_v57, %v2197_v20  ;;  %v1247_v45 = vmul.f32 %v1798_v56, %v2791_v5 }
 0x133   :  { %1993 = vst.msk [vmem:[%s3423_s3 + $0xb8] sm:$0xff] %vm29_vm0, %v1961_v48  ;;  %v1864_v10 = vadd.f32 %v1832_v50, %v1766_v53  ;;  %v1930_v51 = vmul.f32 %v3470_v23, %v1897_v11  ;;  %v1735_v32 = vmul.f32 %v2835_v43, %v1702_v15  ;;  %v1540_v1 = vmul.f32 %v1799_v52, %v2823_v14  ;;  %v1900_v53 = vld [vmem:[#allocation2 + $0x172] sm:$0xff] }
 0x134   :  { %v1669_v19 = vadd.f32 %v1637_v60, %v1571_v38  ;;  %v1474_v24 = vadd.f32 %v1442_v3, %v1376_v44  ;;  %v1279_v6 = vadd.f32 %v1247_v45, %v1181_v34  ;;  %v1345_v28 = vmul.f32 %v1896_v4, %v2808_v9 }
 0x135   :  { %v1962_v56 = vadd.f32 %v1930_v51, %v1864_v10  ;;  %v1833_v12 = vmul.f32 %v2838_v8, %v1800_v39  ;;  %v1638_v37 = vmul.f32 %v1897_v11, %v2828_v21  ;;  %v1150_v22 = vmul.f32 %v1701_v35, %v2777_v30  ;;  %v1705_v10 = vld [vmem:[#allocation2 + $0x180] sm:$0xff] }
 0x136   :  { %v1767_v46 = vadd.f32 %v1735_v32, %v1669_v19  ;;  %v1572_v59 = vadd.f32 %v1540_v1, %v1474_v24  ;;  %v1377_v42 = vadd.f32 %v1345_v28, %v1279_v6  ;;  %v1443_v29 = vmul.f32 %v1702_v15, %v2820_v17  ;;  %v1803_v19 = vld [vmem:[#allocation2 + $0x181] sm:$0xff] }
 0x137   :  { %1994 = vst.msk [vmem:[%s3423_s3 + $0xc0] sm:$0xff] %vm29_vm0, %v1962_v56  ;;  %v1931_v4 = vmul.f32 %v3470_v23, %v1898_v55  ;;  %v1736_v13 = vmul.f32 %v2835_v43, %v1703_v41  ;;  %v1182_v62 = vadd.f32 %v1150_v22, %v2197_v20  ;;  %v1248_v7 = vmul.f32 %v1799_v52, %v2791_v5  ;;  %v1802_v52 = vld [vmem:[#allocation2 + $0x171] sm:$0xff]  ;;  %v1901_v22 = vld [vmem:[#allocation2 + $0x182] sm:$0xff] }
 0x138   :  { %v1865_v35 = vadd.f32 %v1833_v12, %v1767_v46  ;;  %v1670_v2 = vadd.f32 %v1638_v37, %v1572_v59  ;;  %v1475_v58 = vadd.f32 %v1443_v29, %v1377_v42  ;;  %v1541_v16 = vmul.f32 %v1800_v39, %v2823_v14  ;;  %v1706_v42 = vld [vmem:[#allocation2 + $0x188] sm:$0xff] }
 0x139   :  { %v1834_v26 = vmul.f32 %v2838_v8, %v1801_v33  ;;  %v1280_v49 = vadd.f32 %v1248_v7, %v1182_v62  ;;  %v1346_v25 = vmul.f32 %v1897_v11, %v2808_v9  ;;  %v1151_v63 = vmul.f32 %v1702_v15, %v2777_v30 }
 0x13a   :  { %v1963_v61 = vadd.f32 %v1931_v4, %v1865_v35  ;;  %v1768_v36 = vadd.f32 %v1736_v13, %v1670_v2  ;;  %v1573_v40 = vadd.f32 %v1541_v16, %v1475_v58  ;;  %v1639_v50 = vmul.f32 %v1898_v55, %v2828_v21  ;;  %v1804_v58 = vld [vmem:[#allocation2 + $0x189] sm:$0xff] }
 0x13b   :  { %v1378_v31 = vadd.f32 %v1346_v25, %v1280_v49  ;;  %v1444_v18 = vmul.f32 %v1703_v41, %v2820_v17  ;;  %v1183_v0 = vadd.f32 %v1151_v63, %v2197_v20  ;;  %v1249_v27 = vmul.f32 %v1800_v39, %v2791_v5 }
 0x13c   :  { %1995 = vst.msk [vmem:[%s3423_s3 + $0xc8] sm:$0xff] %vm29_vm0, %v1963_v61  ;;  %v1866_v11 = vadd.f32 %v1834_v26, %v1768_v36  ;;  %v1932_v15 = vmul.f32 %v3470_v23, %v1899_v47  ;;  %v1671_v57 = vadd.f32 %v1639_v50, %v1573_v40  ;;  %v1737_v48 = vmul.f32 %v2835_v43, %v1704_v54  ;;  %v1902_v36 = vld [vmem:[#allocation2 + $0x18a] sm:$0xff] }
 0x13d   :  { %v1476_v60 = vadd.f32 %v1444_v18, %v1378_v31  ;;  %v1542_v3 = vmul.f32 %v1801_v33, %v2823_v14  ;;  %v1281_v38 = vadd.f32 %v1249_v27, %v1183_v0  ;;  %v1347_v44 = vmul.f32 %v1898_v55, %v2808_v9  ;;  %v1189_v27 = vld [vmem:[#allocation2 + $0x19] sm:$0xff] }
 0x13e   :  { %v1964_v34 = vadd.f32 %v1932_v15, %v1866_v11  ;;  %v1769_v39 = vadd.f32 %v1737_v48, %v1671_v57  ;;  %v1835_v45 = vmul.f32 %v2838_v8, %v1802_v52  ;;  %v1152_v51 = vmul.f32 %v1703_v41, %v2777_v30  ;;  %v1707_v57 = vld [vmem:[#allocation2 + $0x198] sm:$0xff] }
 0x13f   :  { %v1574_v32 = vadd.f32 %v1542_v3, %v1476_v60  ;;  %v1640_v1 = vmul.f32 %v1899_v47, %v2828_v21  ;;  %v1379_v24 = vadd.f32 %v1347_v44, %v1281_v38  ;;  %v1445_v6 = vmul.f32 %v1704_v54, %v2820_v17 }
 0x140   :  { %1996 = vst.msk [vmem:[%s3423_s3 + $0xd0] sm:$0xff] %vm29_vm0, %v1964_v34  ;;  %v1867_v55 = vadd.f32 %v1835_v45, %v1769_v39  ;;  %v1933_v28 = vmul.f32 %v3470_v23, %v1900_v53  ;;  %v1184_v56 = vadd.f32 %v1152_v51, %v2197_v20  ;;  %v1250_v12 = vmul.f32 %v1801_v33, %v2791_v5  ;;  %v1287_v34 = vld [vmem:[#allocation2 + $0x1a] sm:$0xff] }
 0x141   :  { %v1672_v41 = vadd.f32 %v1640_v1, %v1574_v32  ;;  %v1738_v37 = vmul.f32 %v2835_v43, %v1705_v10  ;;  %v1477_v46 = vadd.f32 %v1445_v6, %v1379_v24  ;;  %v1543_v59 = vmul.f32 %v1802_v52, %v2823_v14  ;;  %v1805_v39 = vld [vmem:[#allocation2 + $0x199] sm:$0xff]  ;;  %v1385_v6 = vld [vmem:[#allocation2 + $0x30] sm:$0xff] }
 0x142   :  { %v1965_v29 = vadd.f32 %v1933_v28, %v1867_v55  ;;  %v1836_v4 = vmul.f32 %v2838_v8, %v1803_v19  ;;  %v1282_v13 = vadd.f32 %v1250_v12, %v1184_v56  ;;  %v1348_v62 = vmul.f32 %v1899_v47, %v2808_v9  ;;  %v1091_v47 = vld [vmem:[#allocation2 + $0x18] sm:$0xff]  ;;  %v1092_v32 = vld [vmem:[#allocation2 + $0x20] sm:$0xff] }
 0x143   :  { %v1770_v7 = vadd.f32 %v1738_v37, %v1672_v41  ;;  %v1575_v35 = vadd.f32 %v1543_v59, %v1477_v46  ;;  %v1641_v2 = vmul.f32 %v1900_v53, %v2828_v21  ;;  %v1153_v33 = vmul.f32 %v1704_v54, %v2777_v30  ;;  %v1903_v28 = vld [vmem:[#allocation2 + $0x19a] sm:$0xff] }
 0x144   :  { %1997 = vst.msk [vmem:[%s3423_s3 + $0xd8] sm:$0xff] %vm29_vm0, %v1965_v29  ;;  %v1934_v16 = vmul.f32 %v3470_v23, %v1901_v22  ;;  %v1739_v26 = vmul.f32 %v2835_v43, %v1706_v42  ;;  %v1380_v49 = vadd.f32 %v1348_v62, %v1282_v13  ;;  %v1446_v25 = vmul.f32 %v1705_v10, %v2820_v17  ;;  %v1190_v37 = vld [vmem:[#allocation2 + $0x21] sm:$0xff] }
 0x145   :  { %v1868_v63 = vadd.f32 %v1836_v4, %v1770_v7  ;;  %v1673_v61 = vadd.f32 %v1641_v2, %v1575_v35  ;;  %v1185_v40 = vadd.f32 %v1153_v33, %v2197_v20  ;;  %v1251_v54 = vmul.f32 %v1802_v52, %v2791_v5  ;;  %v1708_v59 = vld [vmem:[#allocation2 + $0x1a0] sm:$0xff] }
 0x146   :  { %v1837_v50 = vmul.f32 %v2838_v8, %v1804_v58  ;;  %v1478_v31 = vadd.f32 %v1446_v25, %v1380_v49  ;;  %v1544_v18 = vmul.f32 %v1803_v19, %v2823_v14  ;;  %v1349_v0 = vmul.f32 %v1900_v53, %v2808_v9  ;;  %v1288_v35 = vld [vmem:[#allocation2 + $0x22] sm:$0xff] }
 0x147   :  { %v1966_v11 = vadd.f32 %v1934_v16, %v1868_v63  ;;  %v1771_v15 = vadd.f32 %v1739_v26, %v1673_v61  ;;  %v1283_v48 = vadd.f32 %v1251_v54, %v1185_v40  ;;  %v1124_v60 = vmul.f32 %v2777_v30, %v1091_v47  ;;  %v1806_v33 = vld [vmem:[#allocation2 + $0x1a1] sm:$0xff]  ;;  %v1581_v16 = vld [vmem:[#allocation2 + $0x32] sm:$0xff] }
 0x148   :  { %v1935_v3 = vmul.f32 %v3470_v23, %v1902_v36  ;;  %v1576_v38 = vadd.f32 %v1544_v18, %v1478_v31  ;;  %v1642_v44 = vmul.f32 %v1901_v22, %v2828_v21  ;;  %v1447_v52 = vmul.f32 %v1706_v42, %v2820_v17  ;;  %v1483_v42 = vld [vmem:[#allocation2 + $0x31] sm:$0xff]  ;;  %v1904_v40 = vld [vmem:[#allocation2 + $0x1a2] sm:$0xff] }
 0x149   :  { %1998 = vst.msk [vmem:[%s3423_s3 + $0xe0] sm:$0xff] %vm29_vm0, %v1966_v11  ;;  %v1869_v53 = vadd.f32 %v1837_v50, %v1771_v15  ;;  %v1381_v45 = vadd.f32 %v1349_v0, %v1283_v48  ;;  %v1156_v10 = vadd.f32 %v1124_v60, %v2197_v20  ;;  %v1222_v51 = vmul.f32 %v2791_v5, %v1189_v27  ;;  %v1386_v61 = vld [vmem:[#allocation2 + $0x38] sm:$0xff]  ;;  %v1679_v54 = vld [vmem:[#allocation2 + $0x48] sm:$0xff] }
 0x14a   :  { %v1674_v1 = vadd.f32 %v1642_v44, %v1576_v38  ;;  %v1740_v19 = vmul.f32 %v2835_v43, %v1707_v57  ;;  %v1545_v24 = vmul.f32 %v1804_v58, %v2823_v14  ;;  %v1320_v41 = vmul.f32 %v2808_v9, %v1287_v34  ;;  %v1777_v11 = vld [vmem:[#allocation2 + $0x49] sm:$0xff]  ;;  %v1582_v38 = vld [vmem:[#allocation2 + $0x3a] sm:$0xff] }
 0x14b   :  { %v1967_v55 = vadd.f32 %v1935_v3, %v1869_v53  ;;  %v1479_v56 = vadd.f32 %v1447_v52, %v1381_v45  ;;  %v1254_v12 = vadd.f32 %v1222_v51, %v1156_v10  ;;  %v1838_v46 = vmul.f32 %v2838_v8, %v1805_v39  ;;  %v1875_v44 = vld [vmem:[#allocation2 + $0x4a] sm:$0xff] }
 0x14c   :  { %v1772_v22 = vadd.f32 %v1740_v19, %v1674_v1  ;;  %v1125_v29 = vmul.f32 %v2777_v30, %v1092_v32  ;;  %v1643_v13 = vmul.f32 %v1902_v36, %v2828_v21  ;;  %v1418_v7 = vmul.f32 %v2820_v17, %v1385_v6  ;;  %v1680_v10 = vld [vmem:[#allocation2 + $0x50] sm:$0xff] }
 0x14d   :  { %1999 = vst.msk [vmem:[%s3423_s3 + $0xe8] sm:$0xff] %vm29_vm0, %v1967_v55  ;;  %v1577_v4 = vadd.f32 %v1545_v24, %v1479_v56  ;;  %v1352_v62 = vadd.f32 %v1320_v41, %v1254_v12  ;;  %v1936_v58 = vmul.f32 %v3470_v23, %v1903_v28  ;;  %v1223_v30 = vmul.f32 %v2791_v5, %v1190_v37  ;;  %v1484_v5 = vld [vmem:[#allocation2 + $0x39] sm:$0xff]  ;;  %v1778_v19 = vld [vmem:[#allocation2 + $0x51] sm:$0xff] }
 0x14e   :  { %v1870_v2 = vadd.f32 %v1838_v46, %v1772_v22  ;;  %v1157_v26 = vadd.f32 %v1125_v29, %v2197_v20  ;;  %v1741_v25 = vmul.f32 %v2835_v43, %v1708_v59  ;;  %v1516_v63 = vmul.f32 %v2823_v14, %v1483_v42  ;;  %v1876_v55 = vld [vmem:[#allocation2 + $0x52] sm:$0xff] }
 0x14f   :  { %v1675_v49 = vadd.f32 %v1643_v13, %v1577_v4  ;;  %v1450_v47 = vadd.f32 %v1418_v7, %v1352_v62  ;;  %v1321_v31 = vmul.f32 %v2808_v9, %v1288_v35  ;;  %v1839_v0 = vmul.f32 %v2838_v8, %v1806_v33 }
 0x150   :  { %v1968_v36 = vadd.f32 %v1936_v58, %v1870_v2  ;;  %v1255_v50 = vadd.f32 %v1223_v30, %v1157_v26  ;;  %v1614_v20 = vmul.f32 %v2828_v21, %v1581_v16  ;;  %v1419_v57 = vmul.f32 %v2820_v17, %v1386_v61 }
 0x151   :  { %v1773_v18 = vadd.f32 %v1741_v25, %v1675_v49  ;;  %v1548_v27 = vadd.f32 %v1516_v63, %v1450_v47  ;;  %v1937_v60 = vmul.f32 %v3470_v23, %v1904_v40  ;;  %v1712_v3 = vmul.f32 %v2835_v43, %v1679_v54 }
 0x152   :  { %2000 = vst.msk [vmem:[%s3423_s3 + $0xf0] sm:$0xff] %vm29_vm0, %v1968_v36  ;;  %v1353_v15 = vadd.f32 %v1321_v31, %v1255_v50  ;;  %v1517_v34 = vmul.f32 %v2823_v14, %v1484_v5  ;;  %v1810_v45 = vmul.f32 %v2838_v8, %v1777_v11  ;;  %v1615_v32 = vmul.f32 %v2828_v21, %v1582_v38 }
 0x153   :  { %v1871_v48 = vadd.f32 %v1839_v0, %v1773_v18  ;;  %v1646_v9 = vadd.f32 %v1614_v20, %v1548_v27  ;;  %v1908_v1 = vmul.f32 %v3470_v23, %v1875_v44  ;;  %v1713_v14 = vmul.f32 %v2835_v43, %v1680_v10 }
 0x154   :  { %v1451_v52 = vadd.f32 %v1419_v57, %v1353_v15  ;;  %v1811_v56 = vmul.f32 %v2838_v8, %v1778_v19  ;;  %v1909_v12 = vmul.f32 %v3470_v23, %v1876_v55 }
 0x155   :  { %v1969_v53 = vadd.f32 %v1937_v60, %v1871_v48  ;;  %v1744_v39 = vadd.f32 %v1712_v3, %v1646_v9 }
 0x156   :  { %v1549_v51 = vadd.f32 %v1517_v34, %v1451_v52 }
 0x157   :  { %2001 = vst.msk [vmem:[%s3423_s3 + $0xf8] sm:$0xff] %vm29_vm0, %v1969_v53  ;;  %v1842_v17 = vadd.f32 %v1810_v45, %v1744_v39 }
 0x158   :  { %v1647_v24 = vadd.f32 %v1615_v32, %v1549_v51 }
 0x159   :  { %v1940_v6 = vadd.f32 %v1908_v1, %v1842_v17 }
 0x15a   :  { %v1745_v28 = vadd.f32 %v1713_v14, %v1647_v24 }
 0x15b   :  { %1972 = vst.msk [vmem:[%s3423_s3 + $0x10] sm:$0xff] %vm29_vm0, %v1940_v6 }
 0x15c   :  { %v1843_v21 = vadd.f32 %v1811_v56, %v1745_v28 }
 0x15e   :  { %v1941_v41 = vadd.f32 %v1909_v12, %v1843_v21 }
 0x160   :  { %1973 = vst.msk [vmem:[%s3423_s3 + $0x18] sm:$0xff] %vm29_vm0, %v1941_v41 }
 0x161   :  { %2006 = vsyncpa [#allocation5], 1 }

</bundles_post_ra>
